<compile_context>
chip_gen: v6e
topology: v6e:2x2x1
jax: 0.10.0
libtpu: 0.0.40
codegen_flags: <defaults>
</compile_context>

<pallas_src>
import math

import jax
import jax.numpy as jnp
from jax.experimental import pallas as pl
from jax.experimental.pallas import tpu as pltpu

# ----------------------------- small config --------------------------------
BATCH = 2
BT = 1                # sequences folded per grid program (batch tile)
SEQ = 8               # stands in for max_nb_tokens = 230 (pad to 256 at real scale)
HIDDEN = 32           # stands in for distilbert hidden_size = 768
N_HEADS = 4
HEAD_DIM = HIDDEN // N_HEADS
FFN = 4 * HIDDEN
N_LAYERS = 2
VOCAB = 50
NB_CLASSES = 2        # class_names = ['negative', 'positive']
LN_EPS = 1e-12
WDTYPE = jnp.bfloat16  # storage dtype for weights / embedded activations


# ----------------------------- in-kernel helpers ----------------------------

def _layer_norm(x, g, b):
    mean = jnp.mean(x, axis=-1, keepdims=True)
    var = jnp.mean((x - mean) ** 2, axis=-1, keepdims=True)
    return (x - mean) * jax.lax.rsqrt(var + LN_EPS) * g + b


def _gelu_tanh(y):
    # TODO(synk): DistilBERT uses exact erf-GELU; tanh approximation is used
    # (EUP-friendly, ~1e-3 from the erf form).
    c = math.sqrt(2.0 / math.pi)
    return 0.5 * y * (1.0 + jnp.tanh(c * (y + 0.044715 * y * y * y)))


# ----------------------------- fused encoder kernel -------------------------

def _encoder_kernel(x_ref, mask_ref, embg_ref, embb_ref,
                    qkvw_ref, qkvb_ref, ow_ref, ob_ref, ln1g_ref, ln1b_ref,
                    f1w_ref, f1b_ref, f2w_ref, f2b_ref, ln2g_ref, ln2b_ref,
                    fcw_ref, fcb_ref,
                    out_ref,
                    x_carry):
    """Grid = (batch_tile, layer).  One layer's weights streamed per step; the
    activation lives in VMEM scratch across the layer axis."""
    l = pl.program_id(1)
    n_layers = pl.num_programs(1)

    # --- layer 0: embedding LayerNorm seeds the carried activation ----------
    @pl.when(l == 0)
    def _():
        x0 = x_ref[...].reshape(BT * SEQ, HIDDEN).astype(jnp.float32)
        x_carry[...] = _layer_norm(x0, embg_ref[...], embb_ref[...])

    x = x_carry[...]                                   # [BT*S, H] f32
    scale = 1.0 / math.sqrt(HEAD_DIM)

    # --- fused QKV projection: one MXU pass, bf16 in / f32 accumulate -------
    qkv = jnp.dot(x.astype(WDTYPE), qkvw_ref[0],
                  preferred_element_type=jnp.float32) + qkvb_ref[0]   # [BT*S, 3H]
    q = qkv[:, 0 * HIDDEN:1 * HIDDEN]
    k = qkv[:, 1 * HIDDEN:2 * HIDDEN]
    v = qkv[:, 2 * HIDDEN:3 * HIDDEN]

    # --- multi-head attention; per sequence, heads concatenated in registers
    ctx_rows = []
    for bt in range(BT):
        r0 = bt * SEQ
        add_mask = mask_ref[bt]                        # [1, S] additive key mask
        heads = []
        for h in range(N_HEADS):
            lo = h * HEAD_DIM
            qh = q[r0:r0 + SEQ, lo:lo + HEAD_DIM]
            kh = k[r0:r0 + SEQ, lo:lo + HEAD_DIM]
            vh = v[r0:r0 + SEQ, lo:lo + HEAD_DIM]
            # scores = qh @ kh^T (contract head dim, no explicit transpose)
            s = jax.lax.dot_general(qh, kh, (((1,), (1,)), ((), ())),
                                    preferred_element_type=jnp.float32)
            s = s * scale + add_mask
            s = s - jnp.max(s, axis=-1, keepdims=True)
            p = jnp.exp(s)
            p = p * pl.reciprocal(jnp.sum(p, axis=-1, keepdims=True), approx=True)
            heads.append(jnp.dot(p, vh, preferred_element_type=jnp.float32))
        ctx_rows.append(jnp.concatenate(heads, axis=-1))    # [S, H] lane-dense
    ctx = jnp.concatenate(ctx_rows, axis=0) if BT > 1 else ctx_rows[0]

    # --- output projection + residual + LayerNorm ----------------------------
    sa = jnp.dot(ctx.astype(WDTYPE), ow_ref[0],
                 preferred_element_type=jnp.float32) + ob_ref[0]
    x = _layer_norm(x + sa, ln1g_ref[0], ln1b_ref[0])

    # --- feed-forward: bias+GELU fused, then FF2 + residual + LayerNorm ------
    ff = jnp.dot(x.astype(WDTYPE), f1w_ref[0],
                 preferred_element_type=jnp.float32) + f1b_ref[0]
    ff = _gelu_tanh(ff)
    ff = jnp.dot(ff.astype(WDTYPE), f2w_ref[0],
                 preferred_element_type=jnp.float32) + f2b_ref[0]
    x = _layer_norm(x + ff, ln2g_ref[0], ln2b_ref[0])

    x_carry[...] = x                                    # carry to next layer

    # --- last layer: classifier epilogue (flatten+Linear as per-row dots) ----
    @pl.when(l == n_layers - 1)
    def _():
        # logits = flatten(x) @ fc_w + fc_b, with fc_w reshaped to [S, H, C]
        # (no 128-lane padding, no flatten scratch).  Tiny vs encoder FLOPs.
        for bt in range(BT):
            acc = fcb_ref[...].astype(jnp.float32)      # [1, C]
            for s_i in range(SEQ):
                row = x[bt * SEQ + s_i: bt * SEQ + s_i + 1, :]      # [1, H] f32
                acc = acc + jnp.dot(row, fcw_ref[s_i],
                                    preferred_element_type=jnp.float32)
            out_ref[bt] = acc


# ----------------------------- parameters -----------------------------------

def init_params(key):
    scale = 0.02
    keys = jax.random.split(key, 12)

    def norm(k, shape):
        return scale * jax.random.normal(k, shape, jnp.float32)

    return {
        "word_emb": norm(keys[0], (VOCAB, HIDDEN)),
        "pos_emb": norm(keys[1], (SEQ, HIDDEN)),
        "emb_ln_g": jnp.ones((1, HIDDEN), jnp.float32),
        "emb_ln_b": jnp.zeros((1, HIDDEN), jnp.float32),
        # Per-layer weights stacked on a leading layer axis; QKV pre-fused.
        "qkv_w": norm(keys[2], (N_LAYERS, HIDDEN, 3 * HIDDEN)),
        "qkv_b": norm(keys[3], (N_LAYERS, 1, 3 * HIDDEN)),
        "o_w": norm(keys[4], (N_LAYERS, HIDDEN, HIDDEN)),
        "o_b": norm(keys[5], (N_LAYERS, 1, HIDDEN)),
        "ln1_g": jnp.ones((N_LAYERS, 1, HIDDEN), jnp.float32),
        "ln1_b": jnp.zeros((N_LAYERS, 1, HIDDEN), jnp.float32),
        "ff1_w": norm(keys[6], (N_LAYERS, HIDDEN, FFN)),
        "ff1_b": norm(keys[7], (N_LAYERS, 1, FFN)),
        "ff2_w": norm(keys[8], (N_LAYERS, FFN, HIDDEN)),
        "ff2_b": norm(keys[9], (N_LAYERS, 1, HIDDEN)),
        "ln2_g": jnp.ones((N_LAYERS, 1, HIDDEN), jnp.float32),
        "ln2_b": jnp.zeros((N_LAYERS, 1, HIDDEN), jnp.float32),
        # fully_connected: Linear(hidden_size * max_nb_tokens -> nb_classes)
        "fc_w": norm(keys[10], (SEQ * HIDDEN, NB_CLASSES)),
        "fc_b": norm(keys[11], (NB_CLASSES,)),
    }


# ----------------------------- forward (wrapper) -----------------------------

def classifier_forward(params, input_ids, attention_mask):
    """Matches Classifier.forward: distilbert -> last_hidden_state -> flatten -> fc."""
    B, S = input_ids.shape
    assert (B, S) == (BATCH, SEQ)
    assert B % BT == 0

    # Embedding lookup (data-dependent gather) stays as plain-JAX glue;
    # dropout is a no-op in eval.
    x = params["word_emb"][input_ids] + params["pos_emb"][None, :, :]
    x = x.astype(WDTYPE)                                       # bf16 storage

    # Additive attention mask: 0 for kept tokens, -1e9 for padding.  Loaded once
    # per batch program; the block index is constant along the layer axis so it
    # is not re-DMA'd per layer.
    add_mask = ((1.0 - attention_mask.astype(jnp.float32)) * -1e9).reshape(B, 1, S)

    # bf16 weight storage for the big matmuls (f32 accumulation in-kernel).
    qkv_w = params["qkv_w"].astype(WDTYPE)
    o_w = params["o_w"].astype(WDTYPE)
    ff1_w = params["ff1_w"].astype(WDTYPE)
    ff2_w = params["ff2_w"].astype(WDTYPE)
    # Unpadded classifier head: [S*H, C] -> [S, H, C]; kept in f32 (tiny).
    fc_w3 = params["fc_w"].reshape(SEQ, HIDDEN, NB_CLASSES)
    fc_b = params["fc_b"].reshape(1, NB_CLASSES)

    inputs = (x, add_mask, params["emb_ln_g"], params["emb_ln_b"],
              qkv_w, params["qkv_b"], o_w, params["o_b"],
              params["ln1_g"], params["ln1_b"],
              ff1_w, params["ff1_b"], ff2_w, params["ff2_b"],
              params["ln2_g"], params["ln2_b"],
              fc_w3, fc_b)

    def _const_spec(a):
        # Layer-invariant array: full block, constant index -> fetched once per
        # batch program, never re-DMA'd across the layer axis.
        return pl.BlockSpec(a.shape, lambda b, l, _nd=a.ndim: (0,) * _nd)

    def _layer_spec(a):
        # Per-layer stacked array: stream one layer's slice per layer grid step.
        blk = (1,) + a.shape[1:]
        return pl.BlockSpec(blk, lambda b, l, _nd=a.ndim: (l,) + (0,) * (_nd - 1))

    in_specs = [
        pl.BlockSpec((BT, SEQ, HIDDEN), lambda b, l: (b, 0, 0)),   # embedded tokens
        pl.BlockSpec((BT, 1, SEQ), lambda b, l: (b, 0, 0)),        # additive mask
        _const_spec(params["emb_ln_g"]), _const_spec(params["emb_ln_b"]),
        _layer_spec(qkv_w), _layer_spec(params["qkv_b"]),
        _layer_spec(o_w), _layer_spec(params["o_b"]),
        _layer_spec(params["ln1_g"]), _layer_spec(params["ln1_b"]),
        _layer_spec(ff1_w), _layer_spec(params["ff1_b"]),
        _layer_spec(ff2_w), _layer_spec(params["ff2_b"]),
        _layer_spec(params["ln2_g"]), _layer_spec(params["ln2_b"]),
        _const_spec(fc_w3), _const_spec(fc_b),
    ]

    out_shape = jax.ShapeDtypeStruct((B, 1, NB_CLASSES), jnp.float32)
    out_spec = pl.BlockSpec((BT, 1, NB_CLASSES), lambda b, l: (b, 0, 0))

    # Advisory cost estimate so XLA schedules this call sensibly.
    flops = B * (
        N_LAYERS * (2 * SEQ * HIDDEN * 3 * HIDDEN              # fused QKV
                    + N_HEADS * 4 * SEQ * SEQ * HEAD_DIM       # scores + PV
                    + 2 * SEQ * HIDDEN * HIDDEN                # O projection
                    + 4 * SEQ * HIDDEN * FFN)                  # FF1 + FF2
        + 2 * SEQ * HIDDEN * NB_CLASSES)                       # classifier
    transcendentals = B * N_LAYERS * (N_HEADS * SEQ * SEQ + SEQ * FFN)
    weight_bytes = sum(int(a.size) * a.dtype.itemsize for a in inputs[2:])
    act_bytes = int(x.size) * x.dtype.itemsize + int(add_mask.size) * 4
    bytes_accessed = (B // BT) * weight_bytes + act_bytes + B * NB_CLASSES * 4

    logits = pl.pallas_call(
        _encoder_kernel,
        out_shape=out_shape,
        grid=(B // BT, N_LAYERS),
        in_specs=in_specs,
        out_specs=out_spec,
        scratch_shapes=[
            pltpu.VMEM((BT * SEQ, HIDDEN), jnp.float32),   # activation carried across layers
        ],
        compiler_params=pltpu.CompilerParams(
            # batch sharded across TCs; layer axis is a sequential carry
            dimension_semantics=("parallel", "arbitrary"),
            vmem_limit_bytes=32 * 1024 * 1024),
        cost_estimate=pl.CostEstimate(flops=int(flops),
                                      transcendentals=int(transcendentals),
                                      bytes_accessed=int(bytes_accessed)),
    )(*inputs)

    return logits[:, 0, :]


# ----------------------------- pure-JAX reference ----------------------------

def reference_forward(params, input_ids, attention_mask):
    B, S = input_ids.shape
    x = (params["word_emb"][input_ids] + params["pos_emb"][None]).astype(WDTYPE)
    x = x.astype(jnp.float32)
    mask = ((1.0 - attention_mask.astype(jnp.float32)) * -1e9)[:, None, None, :]

    def ln(v, g, b):
        m = jnp.mean(v, -1, keepdims=True)
        var = jnp.mean((v - m) ** 2, -1, keepdims=True)
        return (v - m) * jax.lax.rsqrt(var + LN_EPS) * g + b

    x = ln(x, params["emb_ln_g"], params["emb_ln_b"])
    scale = 1.0 / math.sqrt(HEAD_DIM)
    for li in range(N_LAYERS):
        qkv = jnp.einsum("bsh,hn->bsn", x.astype(WDTYPE), params["qkv_w"][li].astype(WDTYPE),
                         preferred_element_type=jnp.float32) + params["qkv_b"][li]
        q, k, v = jnp.split(qkv, 3, axis=-1)

        def heads(t):
            return t.reshape(B, S, N_HEADS, HEAD_DIM).transpose(0, 2, 1, 3)

        qh, kh, vh = heads(q), heads(k), heads(v)
        s = jnp.einsum("bhqd,bhkd->bhqk", qh, kh) * scale + mask
        p = jax.nn.softmax(s, axis=-1)
        ctx = jnp.einsum("bhqk,bhkd->bhqd", p, vh).transpose(0, 2, 1, 3).reshape(B, S, HIDDEN)
        sa = jnp.einsum("bsh,hn->bsn", ctx.astype(WDTYPE), params["o_w"][li].astype(WDTYPE),
                        preferred_element_type=jnp.float32) + params["o_b"][li]
        x = ln(x + sa, params["ln1_g"][li], params["ln1_b"][li])

        ff = jnp.einsum("bsh,hn->bsn", x.astype(WDTYPE), params["ff1_w"][li].astype(WDTYPE),
                        preferred_element_type=jnp.float32) + params["ff1_b"][li]
        c = math.sqrt(2.0 / math.pi)
        ff = 0.5 * ff * (1.0 + jnp.tanh(c * (ff + 0.044715 * ff ** 3)))
        ff = jnp.einsum("bsn,nh->bsh", ff.astype(WDTYPE), params["ff2_w"][li].astype(WDTYPE),
                        preferred_element_type=jnp.float32) + params["ff2_b"][li]
        x = ln(x + ff, params["ln2_g"][li], params["ln2_b"][li])

    flat = x.reshape(B, SEQ * HIDDEN)
    return flat @ params["fc_w"] + params["fc_b"][None, :]


# ----------------------------- main ------------------------------------------

if __name__ == "__main__":
    root = jax.random.PRNGKey(0)
    k_params, k_ids = jax.random.split(root)

    params = init_params(k_params)
    input_ids = jax.random.randint(k_ids, (BATCH, SEQ), 0, VOCAB, dtype=jnp.int32)
    # Last two tokens of each sequence are padding.
    attention_mask = jnp.ones((BATCH, SEQ), dtype=jnp.int32).at[:, SEQ - 2:].set(0)

    logits = classifier_forward(params, input_ids, attention_mask)
    jax.block_until_ready(logits)
    assert logits.shape == (BATCH, NB_CLASSES)
    assert bool(jnp.all(jnp.isfinite(logits)))

    ref = reference_forward(params, input_ids, attention_mask)
    assert jnp.allclose(logits, ref, atol=2e-2, rtol=2e-2), (logits, ref)
    print("KERNEL_OK")
</pallas_src>

<mosaic_0001>
module attributes {stable_mosaic.version = 11 : i64} {
  func.func @_encoder_kernel(%arg0: i32, %arg1: i32, %arg2: memref<1x8x32xbf16, #tpu.memory_space<vmem>>, %arg3: memref<1x1x8xf32, #tpu.memory_space<vmem>>, %arg4: memref<1x32xf32, #tpu.memory_space<vmem>>, %arg5: memref<1x32xf32, #tpu.memory_space<vmem>>, %arg6: memref<1x32x96xbf16, #tpu.memory_space<vmem>>, %arg7: memref<1x1x96xf32, #tpu.memory_space<vmem>>, %arg8: memref<1x32x32xbf16, #tpu.memory_space<vmem>>, %arg9: memref<1x1x32xf32, #tpu.memory_space<vmem>>, %arg10: memref<1x1x32xf32, #tpu.memory_space<vmem>>, %arg11: memref<1x1x32xf32, #tpu.memory_space<vmem>>, %arg12: memref<1x32x128xbf16, #tpu.memory_space<vmem>>, %arg13: memref<1x1x128xf32, #tpu.memory_space<vmem>>, %arg14: memref<1x128x32xbf16, #tpu.memory_space<vmem>>, %arg15: memref<1x1x32xf32, #tpu.memory_space<vmem>>, %arg16: memref<1x1x32xf32, #tpu.memory_space<vmem>>, %arg17: memref<1x1x32xf32, #tpu.memory_space<vmem>>, %arg18: memref<8x32x2xf32, #tpu.memory_space<vmem>>, %arg19: memref<1x2xf32, #tpu.memory_space<vmem>>, %arg20: memref<1x1x2xf32, #tpu.memory_space<vmem>>, %arg21: memref<8x32xf32, #tpu.memory_space<vmem>>) attributes {dimension_semantics = [#tpu.dimension_semantics<parallel>, #tpu.dimension_semantics<arbitrary>], iteration_bounds = array<i64: 2, 2>, scalar_prefetch = 0 : i64, scratch_operands = 1 : i64, tpu.core_type = #tpu.core_type<tc>, window_params = [{transform_indices = @transform_0, window_bounds = array<i64: 1, 8, 32>}, {transform_indices = @transform_1, window_bounds = array<i64: 1, 1, 8>}, {pipeline_mode = #tpu.pipeline_mode<synchronous>, transform_indices = @transform_2, window_bounds = array<i64: 1, 32>}, {pipeline_mode = #tpu.pipeline_mode<synchronous>, transform_indices = @transform_3, window_bounds = array<i64: 1, 32>}, {transform_indices = @transform_4, window_bounds = array<i64: 1, 32, 96>}, {transform_indices = @transform_5, window_bounds = array<i64: 1, 1, 96>}, {transform_indices = @transform_6, window_bounds = array<i64: 1, 32, 32>}, {transform_indices = @transform_7, window_bounds = array<i64: 1, 1, 32>}, {transform_indices = @transform_8, window_bounds = array<i64: 1, 1, 32>}, {transform_indices = @transform_9, window_bounds = array<i64: 1, 1, 32>}, {transform_indices = @transform_10, window_bounds = array<i64: 1, 32, 128>}, {transform_indices = @transform_11, window_bounds = array<i64: 1, 1, 128>}, {transform_indices = @transform_12, window_bounds = array<i64: 1, 128, 32>}, {transform_indices = @transform_13, window_bounds = array<i64: 1, 1, 32>}, {transform_indices = @transform_14, window_bounds = array<i64: 1, 1, 32>}, {transform_indices = @transform_15, window_bounds = array<i64: 1, 1, 32>}, {pipeline_mode = #tpu.pipeline_mode<synchronous>, transform_indices = @transform_16, window_bounds = array<i64: 8, 32, 2>}, {pipeline_mode = #tpu.pipeline_mode<synchronous>, transform_indices = @transform_17, window_bounds = array<i64: 1, 2>}, {transform_indices = @transform_18, window_bounds = array<i64: 1, 1, 2>}]} {
    %c0_i32 = arith.constant 0 : i32
    %0 = arith.cmpi eq, %arg1, %c0_i32 : i32
    %1 = arith.extui %0 : i1 to i32
    %c0_i32_0 = arith.constant 0 : i32
    %2 = arith.cmpi ne, %1, %c0_i32_0 : i32
    scf.if %2 {
      %c0_81 = arith.constant 0 : index
      %c0_82 = arith.constant 0 : index
      %c0_83 = arith.constant 0 : index
      %189 = vector.load %arg2[%c0_81, %c0_82, %c0_83] : memref<1x8x32xbf16, #tpu.memory_space<vmem>>, vector<1x8x32xbf16>
      %190 = vector.shape_cast %189 : vector<1x8x32xbf16> to vector<8x32xbf16>
      %191 = arith.extf %190 : vector<8x32xbf16> to vector<8x32xf32>
      %c0_84 = arith.constant 0 : index
      %c0_85 = arith.constant 0 : index
      %192 = vector.load %arg4[%c0_84, %c0_85] : memref<1x32xf32, #tpu.memory_space<vmem>>, vector<1x32xf32>
      %c0_86 = arith.constant 0 : index
      %c0_87 = arith.constant 0 : index
      %193 = vector.load %arg5[%c0_86, %c0_87] : memref<1x32xf32, #tpu.memory_space<vmem>>, vector<1x32xf32>
      %cst_88 = arith.constant dense<0.000000e+00> : vector<8xf32>
      %194 = vector.multi_reduction <add>, %191, %cst_88 [1] : vector<8x32xf32> to vector<8xf32>
      %195 = vector.shape_cast %194 : vector<8xf32> to vector<8x1xf32>
      %cst_89 = arith.constant 3.200000e+01 : f32
      %196 = vector.broadcast %cst_89 : f32 to vector<8x1xf32>
      %197 = arith.divf %195, %196 : vector<8x1xf32>
      %198 = vector.broadcast %197 : vector<8x1xf32> to vector<8x32xf32>
      %199 = arith.subf %191, %198 : vector<8x32xf32>
      %200 = arith.mulf %199, %199 : vector<8x32xf32>
      %cst_90 = arith.constant dense<0.000000e+00> : vector<8xf32>
      %201 = vector.multi_reduction <add>, %200, %cst_90 [1] : vector<8x32xf32> to vector<8xf32>
      %202 = vector.shape_cast %201 : vector<8xf32> to vector<8x1xf32>
      %cst_91 = arith.constant 3.200000e+01 : f32
      %203 = vector.broadcast %cst_91 : f32 to vector<8x1xf32>
      %204 = arith.divf %202, %203 : vector<8x1xf32>
      %205 = vector.broadcast %197 : vector<8x1xf32> to vector<8x32xf32>
      %206 = arith.subf %191, %205 : vector<8x32xf32>
      %cst_92 = arith.constant 9.99999996E-13 : f32
      %207 = vector.broadcast %cst_92 : f32 to vector<8x1xf32>
      %208 = arith.addf %204, %207 : vector<8x1xf32>
      %209 = math.rsqrt %208 : vector<8x1xf32>
      %210 = vector.broadcast %209 : vector<8x1xf32> to vector<8x32xf32>
      %211 = arith.mulf %206, %210 : vector<8x32xf32>
      %212 = vector.broadcast %192 : vector<1x32xf32> to vector<8x32xf32>
      %213 = arith.mulf %211, %212 : vector<8x32xf32>
      %214 = vector.broadcast %193 : vector<1x32xf32> to vector<8x32xf32>
      %215 = arith.addf %213, %214 : vector<8x32xf32>
      %c0_93 = arith.constant 0 : index
      %c0_94 = arith.constant 0 : index
      %216 = vector.load %arg21[%c0_93, %c0_94] : memref<8x32xf32, #tpu.memory_space<vmem>>, vector<8x32xf32>
      tpu.vector_store %arg21[%c0_93, %c0_94], %215 {strides = array<i32>} : memref<8x32xf32, #tpu.memory_space<vmem>>, vector<8x32xf32>,
    } else {
    }
    %c0 = arith.constant 0 : index
    %c0_1 = arith.constant 0 : index
    %3 = vector.load %arg21[%c0, %c0_1] : memref<8x32xf32, #tpu.memory_space<vmem>>, vector<8x32xf32>
    %4 = arith.truncf %3 : vector<8x32xf32> to vector<8x32xbf16>
    %c0_2 = arith.constant 0 : index
    %c0_3 = arith.constant 0 : index
    %c0_4 = arith.constant 0 : index
    %5 = vector.load %arg6[%c0_2, %c0_3, %c0_4] : memref<1x32x96xbf16, #tpu.memory_space<vmem>>, vector<1x32x96xbf16>
    %6 = vector.shape_cast %5 : vector<1x32x96xbf16> to vector<32x96xbf16>
    %cst = arith.constant dense<0.000000e+00> : vector<8x96xf32>
    %7 = tpu.matmul %4, %6, %cst {dimension_numbers = #tpu.dot_dimension_numbers<[1], [0], [0], [1], [0, 0, 1, 1], [], []>} : vector<8x32xbf16>, vector<32x96xbf16>, vector<8x96xf32> -> vector<8x96xf32>
    %c0_5 = arith.constant 0 : index
    %c0_6 = arith.constant 0 : index
    %c0_7 = arith.constant 0 : index
    %8 = vector.load %arg7[%c0_5, %c0_6, %c0_7] : memref<1x1x96xf32, #tpu.memory_space<vmem>>, vector<1x1x96xf32>
    %9 = vector.shape_cast %8 : vector<1x1x96xf32> to vector<1x96xf32>
    %10 = vector.broadcast %9 : vector<1x96xf32> to vector<8x96xf32>
    %11 = arith.addf %7, %10 : vector<8x96xf32>
    %12 = vector.extract_strided_slice %11 {offsets = [0, 0], sizes = [8, 32], strides = [1, 1]} : vector<8x96xf32> to vector<8x32xf32>
    %13 = vector.extract_strided_slice %11 {offsets = [0, 32], sizes = [8, 32], strides = [1, 1]} : vector<8x96xf32> to vector<8x32xf32>
    %14 = vector.extract_strided_slice %11 {offsets = [0, 64], sizes = [8, 32], strides = [1, 1]} : vector<8x96xf32> to vector<8x32xf32>
    %c0_8 = arith.constant 0 : index
    %c0_9 = arith.constant 0 : index
    %c0_10 = arith.constant 0 : index
    %15 = vector.load %arg3[%c0_8, %c0_9, %c0_10] : memref<1x1x8xf32, #tpu.memory_space<vmem>>, vector<1x1x8xf32>
    %16 = vector.shape_cast %15 : vector<1x1x8xf32> to vector<1x8xf32>
    %17 = vector.extract_strided_slice %12 {offsets = [0, 0], sizes = [8, 8], strides = [1, 1]} : vector<8x32xf32> to vector<8x8xf32>
    %18 = vector.extract_strided_slice %13 {offsets = [0, 0], sizes = [8, 8], strides = [1, 1]} : vector<8x32xf32> to vector<8x8xf32>
    %19 = vector.extract_strided_slice %14 {offsets = [0, 0], sizes = [8, 8], strides = [1, 1]} : vector<8x32xf32> to vector<8x8xf32>
    %cst_11 = arith.constant dense<0.000000e+00> : vector<8x8xf32>
    %20 = tpu.matmul %17, %18, %cst_11 {dimension_numbers = #tpu.dot_dimension_numbers<[1], [1], [0], [0], [0, 0, 1, 0], [], []>} : vector<8x8xf32>, vector<8x8xf32>, vector<8x8xf32> -> vector<8x8xf32>
    %cst_12 = arith.constant 0.353553385 : f32
    %21 = vector.broadcast %cst_12 : f32 to vector<8x8xf32>
    %22 = arith.mulf %20, %21 : vector<8x8xf32>
    %23 = vector.broadcast %16 : vector<1x8xf32> to vector<8x8xf32>
    %24 = arith.addf %22, %23 : vector<8x8xf32>
    %cst_13 = arith.constant dense<0xFF800000> : vector<8xf32>
    %25 = vector.multi_reduction <maximumf>, %24, %cst_13 [1] : vector<8x8xf32> to vector<8xf32>
    %26 = vector.shape_cast %25 : vector<8xf32> to vector<8x1xf32>
    %27 = vector.broadcast %26 : vector<8x1xf32> to vector<8x8xf32>
    %28 = arith.subf %24, %27 : vector<8x8xf32>
    %29 = math.exp %28 : vector<8x8xf32>
    %cst_14 = arith.constant dense<0.000000e+00> : vector<8xf32>
    %30 = vector.multi_reduction <add>, %29, %cst_14 [1] : vector<8x8xf32> to vector<8xf32>
    %31 = vector.shape_cast %30 : vector<8xf32> to vector<8x1xf32>
    %32 = tpu.reciprocal %31 {approx = true} : vector<8x1xf32> -> vector<8x1xf32>
    %33 = vector.broadcast %32 : vector<8x1xf32> to vector<8x8xf32>
    %34 = arith.mulf %29, %33 : vector<8x8xf32>
    %cst_15 = arith.constant dense<0.000000e+00> : vector<8x8xf32>
    %35 = tpu.matmul %34, %19, %cst_15 {dimension_numbers = #tpu.dot_dimension_numbers<[1], [0], [0], [1], [0, 0, 1, 1], [], []>} : vector<8x8xf32>, vector<8x8xf32>, vector<8x8xf32> -> vector<8x8xf32>
    %36 = vector.extract_strided_slice %12 {offsets = [0, 8], sizes = [8, 8], strides = [1, 1]} : vector<8x32xf32> to vector<8x8xf32>
    %37 = vector.extract_strided_slice %13 {offsets = [0, 8], sizes = [8, 8], strides = [1, 1]} : vector<8x32xf32> to vector<8x8xf32>
    %38 = vector.extract_strided_slice %14 {offsets = [0, 8], sizes = [8, 8], strides = [1, 1]} : vector<8x32xf32> to vector<8x8xf32>
    %cst_16 = arith.constant dense<0.000000e+00> : vector<8x8xf32>
    %39 = tpu.matmul %36, %37, %cst_16 {dimension_numbers = #tpu.dot_dimension_numbers<[1], [1], [0], [0], [0, 0, 1, 0], [], []>} : vector<8x8xf32>, vector<8x8xf32>, vector<8x8xf32> -> vector<8x8xf32>
    %cst_17 = arith.constant 0.353553385 : f32
    %40 = vector.broadcast %cst_17 : f32 to vector<8x8xf32>
    %41 = arith.mulf %39, %40 : vector<8x8xf32>
    %42 = vector.broadcast %16 : vector<1x8xf32> to vector<8x8xf32>
    %43 = arith.addf %41, %42 : vector<8x8xf32>
    %cst_18 = arith.constant dense<0xFF800000> : vector<8xf32>
    %44 = vector.multi_reduction <maximumf>, %43, %cst_18 [1] : vector<8x8xf32> to vector<8xf32>
    %45 = vector.shape_cast %44 : vector<8xf32> to vector<8x1xf32>
    %46 = vector.broadcast %45 : vector<8x1xf32> to vector<8x8xf32>
    %47 = arith.subf %43, %46 : vector<8x8xf32>
    %48 = math.exp %47 : vector<8x8xf32>
    %cst_19 = arith.constant dense<0.000000e+00> : vector<8xf32>
    %49 = vector.multi_reduction <add>, %48, %cst_19 [1] : vector<8x8xf32> to vector<8xf32>
    %50 = vector.shape_cast %49 : vector<8xf32> to vector<8x1xf32>
    %51 = tpu.reciprocal %50 {approx = true} : vector<8x1xf32> -> vector<8x1xf32>
    %52 = vector.broadcast %51 : vector<8x1xf32> to vector<8x8xf32>
    %53 = arith.mulf %48, %52 : vector<8x8xf32>
    %cst_20 = arith.constant dense<0.000000e+00> : vector<8x8xf32>
    %54 = tpu.matmul %53, %38, %cst_20 {dimension_numbers = #tpu.dot_dimension_numbers<[1], [0], [0], [1], [0, 0, 1, 1], [], []>} : vector<8x8xf32>, vector<8x8xf32>, vector<8x8xf32> -> vector<8x8xf32>
    %55 = vector.extract_strided_slice %12 {offsets = [0, 16], sizes = [8, 8], strides = [1, 1]} : vector<8x32xf32> to vector<8x8xf32>
    %56 = vector.extract_strided_slice %13 {offsets = [0, 16], sizes = [8, 8], strides = [1, 1]} : vector<8x32xf32> to vector<8x8xf32>
    %57 = vector.extract_strided_slice %14 {offsets = [0, 16], sizes = [8, 8], strides = [1, 1]} : vector<8x32xf32> to vector<8x8xf32>
    %cst_21 = arith.constant dense<0.000000e+00> : vector<8x8xf32>
    %58 = tpu.matmul %55, %56, %cst_21 {dimension_numbers = #tpu.dot_dimension_numbers<[1], [1], [0], [0], [0, 0, 1, 0], [], []>} : vector<8x8xf32>, vector<8x8xf32>, vector<8x8xf32> -> vector<8x8xf32>
    %cst_22 = arith.constant 0.353553385 : f32
    %59 = vector.broadcast %cst_22 : f32 to vector<8x8xf32>
    %60 = arith.mulf %58, %59 : vector<8x8xf32>
    %61 = vector.broadcast %16 : vector<1x8xf32> to vector<8x8xf32>
    %62 = arith.addf %60, %61 : vector<8x8xf32>
    %cst_23 = arith.constant dense<0xFF800000> : vector<8xf32>
    %63 = vector.multi_reduction <maximumf>, %62, %cst_23 [1] : vector<8x8xf32> to vector<8xf32>
    %64 = vector.shape_cast %63 : vector<8xf32> to vector<8x1xf32>
    %65 = vector.broadcast %64 : vector<8x1xf32> to vector<8x8xf32>
    %66 = arith.subf %62, %65 : vector<8x8xf32>
    %67 = math.exp %66 : vector<8x8xf32>
    %cst_24 = arith.constant dense<0.000000e+00> : vector<8xf32>
    %68 = vector.multi_reduction <add>, %67, %cst_24 [1] : vector<8x8xf32> to vector<8xf32>
    %69 = vector.shape_cast %68 : vector<8xf32> to vector<8x1xf32>
    %70 = tpu.reciprocal %69 {approx = true} : vector<8x1xf32> -> vector<8x1xf32>
    %71 = vector.broadcast %70 : vector<8x1xf32> to vector<8x8xf32>
    %72 = arith.mulf %67, %71 : vector<8x8xf32>
    %cst_25 = arith.constant dense<0.000000e+00> : vector<8x8xf32>
    %73 = tpu.matmul %72, %57, %cst_25 {dimension_numbers = #tpu.dot_dimension_numbers<[1], [0], [0], [1], [0, 0, 1, 1], [], []>} : vector<8x8xf32>, vector<8x8xf32>, vector<8x8xf32> -> vector<8x8xf32>
    %74 = vector.extract_strided_slice %12 {offsets = [0, 24], sizes = [8, 8], strides = [1, 1]} : vector<8x32xf32> to vector<8x8xf32>
    %75 = vector.extract_strided_slice %13 {offsets = [0, 24], sizes = [8, 8], strides = [1, 1]} : vector<8x32xf32> to vector<8x8xf32>
    %76 = vector.extract_strided_slice %14 {offsets = [0, 24], sizes = [8, 8], strides = [1, 1]} : vector<8x32xf32> to vector<8x8xf32>
    %cst_26 = arith.constant dense<0.000000e+00> : vector<8x8xf32>
    %77 = tpu.matmul %74, %75, %cst_26 {dimension_numbers = #tpu.dot_dimension_numbers<[1], [1], [0], [0], [0, 0, 1, 0], [], []>} : vector<8x8xf32>, vector<8x8xf32>, vector<8x8xf32> -> vector<8x8xf32>
    %cst_27 = arith.constant 0.353553385 : f32
    %78 = vector.broadcast %cst_27 : f32 to vector<8x8xf32>
    %79 = arith.mulf %77, %78 : vector<8x8xf32>
    %80 = vector.broadcast %16 : vector<1x8xf32> to vector<8x8xf32>
    %81 = arith.addf %79, %80 : vector<8x8xf32>
    %cst_28 = arith.constant dense<0xFF800000> : vector<8xf32>
    %82 = vector.multi_reduction <maximumf>, %81, %cst_28 [1] : vector<8x8xf32> to vector<8xf32>
    %83 = vector.shape_cast %82 : vector<8xf32> to vector<8x1xf32>
    %84 = vector.broadcast %83 : vector<8x1xf32> to vector<8x8xf32>
    %85 = arith.subf %81, %84 : vector<8x8xf32>
    %86 = math.exp %85 : vector<8x8xf32>
    %cst_29 = arith.constant dense<0.000000e+00> : vector<8xf32>
    %87 = vector.multi_reduction <add>, %86, %cst_29 [1] : vector<8x8xf32> to vector<8xf32>
    %88 = vector.shape_cast %87 : vector<8xf32> to vector<8x1xf32>
    %89 = tpu.reciprocal %88 {approx = true} : vector<8x1xf32> -> vector<8x1xf32>
    %90 = vector.broadcast %89 : vector<8x1xf32> to vector<8x8xf32>
    %91 = arith.mulf %86, %90 : vector<8x8xf32>
    %cst_30 = arith.constant dense<0.000000e+00> : vector<8x8xf32>
    %92 = tpu.matmul %91, %76, %cst_30 {dimension_numbers = #tpu.dot_dimension_numbers<[1], [0], [0], [1], [0, 0, 1, 1], [], []>} : vector<8x8xf32>, vector<8x8xf32>, vector<8x8xf32> -> vector<8x8xf32>
    %93 = tpu.concatenate %35, %54, %73, %92 in 1 : vector<8x8xf32>, vector<8x8xf32>, vector<8x8xf32>, vector<8x8xf32> -> vector<8x32xf32>
    %94 = arith.truncf %93 : vector<8x32xf32> to vector<8x32xbf16>
    %c0_31 = arith.constant 0 : index
    %c0_32 = arith.constant 0 : index
    %c0_33 = arith.constant 0 : index
    %95 = vector.load %arg8[%c0_31, %c0_32, %c0_33] : memref<1x32x32xbf16, #tpu.memory_space<vmem>>, vector<1x32x32xbf16>
    %96 = vector.shape_cast %95 : vector<1x32x32xbf16> to vector<32x32xbf16>
    %cst_34 = arith.constant dense<0.000000e+00> : vector<8x32xf32>
    %97 = tpu.matmul %94, %96, %cst_34 {dimension_numbers = #tpu.dot_dimension_numbers<[1], [0], [0], [1], [0, 0, 1, 1], [], []>} : vector<8x32xbf16>, vector<32x32xbf16>, vector<8x32xf32> -> vector<8x32xf32>
    %c0_35 = arith.constant 0 : index
    %c0_36 = arith.constant 0 : index
    %c0_37 = arith.constant 0 : index
    %98 = vector.load %arg9[%c0_35, %c0_36, %c0_37] : memref<1x1x32xf32, #tpu.memory_space<vmem>>, vector<1x1x32xf32>
    %99 = vector.shape_cast %98 : vector<1x1x32xf32> to vector<1x32xf32>
    %100 = vector.broadcast %99 : vector<1x32xf32> to vector<8x32xf32>
    %101 = arith.addf %97, %100 : vector<8x32xf32>
    %102 = arith.addf %3, %101 : vector<8x32xf32>
    %c0_38 = arith.constant 0 : index
    %c0_39 = arith.constant 0 : index
    %c0_40 = arith.constant 0 : index
    %103 = vector.load %arg10[%c0_38, %c0_39, %c0_40] : memref<1x1x32xf32, #tpu.memory_space<vmem>>, vector<1x1x32xf32>
    %104 = vector.shape_cast %103 : vector<1x1x32xf32> to vector<1x32xf32>
    %c0_41 = arith.constant 0 : index
    %c0_42 = arith.constant 0 : index
    %c0_43 = arith.constant 0 : index
    %105 = vector.load %arg11[%c0_41, %c0_42, %c0_43] : memref<1x1x32xf32, #tpu.memory_space<vmem>>, vector<1x1x32xf32>
    %106 = vector.shape_cast %105 : vector<1x1x32xf32> to vector<1x32xf32>
    %cst_44 = arith.constant dense<0.000000e+00> : vector<8xf32>
    %107 = vector.multi_reduction <add>, %102, %cst_44 [1] : vector<8x32xf32> to vector<8xf32>
    %108 = vector.shape_cast %107 : vector<8xf32> to vector<8x1xf32>
    %cst_45 = arith.constant 3.200000e+01 : f32
    %109 = vector.broadcast %cst_45 : f32 to vector<8x1xf32>
    %110 = arith.divf %108, %109 : vector<8x1xf32>
    %111 = vector.broadcast %110 : vector<8x1xf32> to vector<8x32xf32>
    %112 = arith.subf %102, %111 : vector<8x32xf32>
    %113 = arith.mulf %112, %112 : vector<8x32xf32>
    %cst_46 = arith.constant dense<0.000000e+00> : vector<8xf32>
    %114 = vector.multi_reduction <add>, %113, %cst_46 [1] : vector<8x32xf32> to vector<8xf32>
    %115 = vector.shape_cast %114 : vector<8xf32> to vector<8x1xf32>
    %cst_47 = arith.constant 3.200000e+01 : f32
    %116 = vector.broadcast %cst_47 : f32 to vector<8x1xf32>
    %117 = arith.divf %115, %116 : vector<8x1xf32>
    %118 = vector.broadcast %110 : vector<8x1xf32> to vector<8x32xf32>
    %119 = arith.subf %102, %118 : vector<8x32xf32>
    %cst_48 = arith.constant 9.99999996E-13 : f32
    %120 = vector.broadcast %cst_48 : f32 to vector<8x1xf32>
    %121 = arith.addf %117, %120 : vector<8x1xf32>
    %122 = math.rsqrt %121 : vector<8x1xf32>
    %123 = vector.broadcast %122 : vector<8x1xf32> to vector<8x32xf32>
    %124 = arith.mulf %119, %123 : vector<8x32xf32>
    %125 = vector.broadcast %104 : vector<1x32xf32> to vector<8x32xf32>
    %126 = arith.mulf %124, %125 : vector<8x32xf32>
    %127 = vector.broadcast %106 : vector<1x32xf32> to vector<8x32xf32>
    %128 = arith.addf %126, %127 : vector<8x32xf32>
    %129 = arith.truncf %128 : vector<8x32xf32> to vector<8x32xbf16>
    %c0_49 = arith.constant 0 : index
    %c0_50 = arith.constant 0 : index
    %c0_51 = arith.constant 0 : index
    %130 = vector.load %arg12[%c0_49, %c0_50, %c0_51] : memref<1x32x128xbf16, #tpu.memory_space<vmem>>, vector<1x32x128xbf16>
    %131 = vector.shape_cast %130 : vector<1x32x128xbf16> to vector<32x128xbf16>
    %cst_52 = arith.constant dense<0.000000e+00> : vector<8x128xf32>
    %132 = tpu.matmul %129, %131, %cst_52 {dimension_numbers = #tpu.dot_dimension_numbers<[1], [0], [0], [1], [0, 0, 1, 1], [], []>} : vector<8x32xbf16>, vector<32x128xbf16>, vector<8x128xf32> -> vector<8x128xf32>
    %c0_53 = arith.constant 0 : index
    %c0_54 = arith.constant 0 : index
    %c0_55 = arith.constant 0 : index
    %133 = vector.load %arg13[%c0_53, %c0_54, %c0_55] : memref<1x1x128xf32, #tpu.memory_space<vmem>>, vector<1x1x128xf32>
    %134 = vector.shape_cast %133 : vector<1x1x128xf32> to vector<1x128xf32>
    %135 = vector.broadcast %134 : vector<1x128xf32> to vector<8x128xf32>
    %136 = arith.addf %132, %135 : vector<8x128xf32>
    %cst_56 = arith.constant 5.000000e-01 : f32
    %137 = vector.broadcast %cst_56 : f32 to vector<8x128xf32>
    %138 = arith.mulf %137, %136 : vector<8x128xf32>
    %cst_57 = arith.constant 4.471500e-02 : f32
    %139 = vector.broadcast %cst_57 : f32 to vector<8x128xf32>
    %140 = arith.mulf %139, %136 : vector<8x128xf32>
    %141 = arith.mulf %140, %136 : vector<8x128xf32>
    %142 = arith.mulf %141, %136 : vector<8x128xf32>
    %143 = arith.addf %136, %142 : vector<8x128xf32>
    %cst_58 = arith.constant 0.797884583 : f32
    %144 = vector.broadcast %cst_58 : f32 to vector<8x128xf32>
    %145 = arith.mulf %144, %143 : vector<8x128xf32>
    %146 = math.tanh %145 : vector<8x128xf32>
    %cst_59 = arith.constant 1.000000e+00 : f32
    %147 = vector.broadcast %cst_59 : f32 to vector<8x128xf32>
    %148 = arith.addf %147, %146 : vector<8x128xf32>
    %149 = arith.mulf %138, %148 : vector<8x128xf32>
    %150 = arith.truncf %149 : vector<8x128xf32> to vector<8x128xbf16>
    %c0_60 = arith.constant 0 : index
    %c0_61 = arith.constant 0 : index
    %c0_62 = arith.constant 0 : index
    %151 = vector.load %arg14[%c0_60, %c0_61, %c0_62] : memref<1x128x32xbf16, #tpu.memory_space<vmem>>, vector<1x128x32xbf16>
    %152 = vector.shape_cast %151 : vector<1x128x32xbf16> to vector<128x32xbf16>
    %cst_63 = arith.constant dense<0.000000e+00> : vector<8x32xf32>
    %153 = tpu.matmul %150, %152, %cst_63 {dimension_numbers = #tpu.dot_dimension_numbers<[1], [0], [0], [1], [0, 0, 1, 1], [], []>} : vector<8x128xbf16>, vector<128x32xbf16>, vector<8x32xf32> -> vector<8x32xf32>
    %c0_64 = arith.constant 0 : index
    %c0_65 = arith.constant 0 : index
    %c0_66 = arith.constant 0 : index
    %154 = vector.load %arg15[%c0_64, %c0_65, %c0_66] : memref<1x1x32xf32, #tpu.memory_space<vmem>>, vector<1x1x32xf32>
    %155 = vector.shape_cast %154 : vector<1x1x32xf32> to vector<1x32xf32>
    %156 = vector.broadcast %155 : vector<1x32xf32> to vector<8x32xf32>
    %157 = arith.addf %153, %156 : vector<8x32xf32>
    %158 = arith.addf %128, %157 : vector<8x32xf32>
    %c0_67 = arith.constant 0 : index
    %c0_68 = arith.constant 0 : index
    %c0_69 = arith.constant 0 : index
    %159 = vector.load %arg16[%c0_67, %c0_68, %c0_69] : memref<1x1x32xf32, #tpu.memory_space<vmem>>, vector<1x1x32xf32>
    %160 = vector.shape_cast %159 : vector<1x1x32xf32> to vector<1x32xf32>
    %c0_70 = arith.constant 0 : index
    %c0_71 = arith.constant 0 : index
    %c0_72 = arith.constant 0 : index
    %161 = vector.load %arg17[%c0_70, %c0_71, %c0_72] : memref<1x1x32xf32, #tpu.memory_space<vmem>>, vector<1x1x32xf32>
    %162 = vector.shape_cast %161 : vector<1x1x32xf32> to vector<1x32xf32>
    %cst_73 = arith.constant dense<0.000000e+00> : vector<8xf32>
    %163 = vector.multi_reduction <add>, %158, %cst_73 [1] : vector<8x32xf32> to vector<8xf32>
    %164 = vector.shape_cast %163 : vector<8xf32> to vector<8x1xf32>
    %cst_74 = arith.constant 3.200000e+01 : f32
    %165 = vector.broadcast %cst_74 : f32 to vector<8x1xf32>
    %166 = arith.divf %164, %165 : vector<8x1xf32>
    %167 = vector.broadcast %166 : vector<8x1xf32> to vector<8x32xf32>
    %168 = arith.subf %158, %167 : vector<8x32xf32>
    %169 = arith.mulf %168, %168 : vector<8x32xf32>
    %cst_75 = arith.constant dense<0.000000e+00> : vector<8xf32>
    %170 = vector.multi_reduction <add>, %169, %cst_75 [1] : vector<8x32xf32> to vector<8xf32>
    %171 = vector.shape_cast %170 : vector<8xf32> to vector<8x1xf32>
    %cst_76 = arith.constant 3.200000e+01 : f32
    %172 = vector.broadcast %cst_76 : f32 to vector<8x1xf32>
    %173 = arith.divf %171, %172 : vector<8x1xf32>
    %174 = vector.broadcast %166 : vector<8x1xf32> to vector<8x32xf32>
    %175 = arith.subf %158, %174 : vector<8x32xf32>
    %cst_77 = arith.constant 9.99999996E-13 : f32
    %176 = vector.broadcast %cst_77 : f32 to vector<8x1xf32>
    %177 = arith.addf %173, %176 : vector<8x1xf32>
    %178 = math.rsqrt %177 : vector<8x1xf32>
    %179 = vector.broadcast %178 : vector<8x1xf32> to vector<8x32xf32>
    %180 = arith.mulf %175, %179 : vector<8x32xf32>
    %181 = vector.broadcast %160 : vector<1x32xf32> to vector<8x32xf32>
    %182 = arith.mulf %180, %181 : vector<8x32xf32>
    %183 = vector.broadcast %162 : vector<1x32xf32> to vector<8x32xf32>
    %184 = arith.addf %182, %183 : vector<8x32xf32>
    %c0_78 = arith.constant 0 : index
    %c0_79 = arith.constant 0 : index
    %185 = vector.load %arg21[%c0_78, %c0_79] : memref<8x32xf32, #tpu.memory_space<vmem>>, vector<8x32xf32>
    tpu.vector_store %arg21[%c0_78, %c0_79], %184 {strides = array<i32>} : memref<8x32xf32, #tpu.memory_space<vmem>>, vector<8x32xf32>,
    %c1_i32 = arith.constant 1 : i32
    %186 = arith.cmpi eq, %arg1, %c1_i32 : i32
    %187 = arith.extui %186 : i1 to i32
    %c0_i32_80 = arith.constant 0 : i32
    %188 = arith.cmpi ne, %187, %c0_i32_80 : i32
    scf.if %188 {
      %c0_81 = arith.constant 0 : index
      %c0_82 = arith.constant 0 : index
      %189 = vector.load %arg19[%c0_81, %c0_82] : memref<1x2xf32, #tpu.memory_space<vmem>>, vector<1x2xf32>
      %190 = vector.extract_strided_slice %184 {offsets = [0, 0], sizes = [1, 32], strides = [1, 1]} : vector<8x32xf32> to vector<1x32xf32>
      %c0_83 = arith.constant 0 : index
      %c0_84 = arith.constant 0 : index
      %c0_85 = arith.constant 0 : index
      %191 = vector.load %arg18[%c0_83, %c0_84, %c0_85] : memref<8x32x2xf32, #tpu.memory_space<vmem>>, vector<1x32x2xf32>
      %192 = vector.shape_cast %191 : vector<1x32x2xf32> to vector<32x2xf32>
      %cst_86 = arith.constant dense<0.000000e+00> : vector<1x2xf32>
      %193 = tpu.matmul %190, %192, %cst_86 {dimension_numbers = #tpu.dot_dimension_numbers<[1], [0], [0], [1], [0, 0, 1, 1], [], []>} : vector<1x32xf32>, vector<32x2xf32>, vector<1x2xf32> -> vector<1x2xf32>
      %194 = arith.addf %189, %193 : vector<1x2xf32>
      %195 = vector.extract_strided_slice %184 {offsets = [1, 0], sizes = [1, 32], strides = [1, 1]} : vector<8x32xf32> to vector<1x32xf32>
      %c1 = arith.constant 1 : index
      %c0_87 = arith.constant 0 : index
      %c0_88 = arith.constant 0 : index
      %196 = vector.load %arg18[%c1, %c0_87, %c0_88] : memref<8x32x2xf32, #tpu.memory_space<vmem>>, vector<1x32x2xf32>
      %197 = vector.shape_cast %196 : vector<1x32x2xf32> to vector<32x2xf32>
      %cst_89 = arith.constant dense<0.000000e+00> : vector<1x2xf32>
      %198 = tpu.matmul %195, %197, %cst_89 {dimension_numbers = #tpu.dot_dimension_numbers<[1], [0], [0], [1], [0, 0, 1, 1], [], []>} : vector<1x32xf32>, vector<32x2xf32>, vector<1x2xf32> -> vector<1x2xf32>
      %199 = arith.addf %194, %198 : vector<1x2xf32>
      %200 = vector.extract_strided_slice %184 {offsets = [2, 0], sizes = [1, 32], strides = [1, 1]} : vector<8x32xf32> to vector<1x32xf32>
      %c2 = arith.constant 2 : index
      %c0_90 = arith.constant 0 : index
      %c0_91 = arith.constant 0 : index
      %201 = vector.load %arg18[%c2, %c0_90, %c0_91] : memref<8x32x2xf32, #tpu.memory_space<vmem>>, vector<1x32x2xf32>
      %202 = vector.shape_cast %201 : vector<1x32x2xf32> to vector<32x2xf32>
      %cst_92 = arith.constant dense<0.000000e+00> : vector<1x2xf32>
      %203 = tpu.matmul %200, %202, %cst_92 {dimension_numbers = #tpu.dot_dimension_numbers<[1], [0], [0], [1], [0, 0, 1, 1], [], []>} : vector<1x32xf32>, vector<32x2xf32>, vector<1x2xf32> -> vector<1x2xf32>
      %204 = arith.addf %199, %203 : vector<1x2xf32>
      %205 = vector.extract_strided_slice %184 {offsets = [3, 0], sizes = [1, 32], strides = [1, 1]} : vector<8x32xf32> to vector<1x32xf32>
      %c3 = arith.constant 3 : index
      %c0_93 = arith.constant 0 : index
      %c0_94 = arith.constant 0 : index
      %206 = vector.load %arg18[%c3, %c0_93, %c0_94] : memref<8x32x2xf32, #tpu.memory_space<vmem>>, vector<1x32x2xf32>
      %207 = vector.shape_cast %206 : vector<1x32x2xf32> to vector<32x2xf32>
      %cst_95 = arith.constant dense<0.000000e+00> : vector<1x2xf32>
      %208 = tpu.matmul %205, %207, %cst_95 {dimension_numbers = #tpu.dot_dimension_numbers<[1], [0], [0], [1], [0, 0, 1, 1], [], []>} : vector<1x32xf32>, vector<32x2xf32>, vector<1x2xf32> -> vector<1x2xf32>
      %209 = arith.addf %204, %208 : vector<1x2xf32>
      %210 = vector.extract_strided_slice %184 {offsets = [4, 0], sizes = [1, 32], strides = [1, 1]} : vector<8x32xf32> to vector<1x32xf32>
      %c4 = arith.constant 4 : index
      %c0_96 = arith.constant 0 : index
      %c0_97 = arith.constant 0 : index
      %211 = vector.load %arg18[%c4, %c0_96, %c0_97] : memref<8x32x2xf32, #tpu.memory_space<vmem>>, vector<1x32x2xf32>
      %212 = vector.shape_cast %211 : vector<1x32x2xf32> to vector<32x2xf32>
      %cst_98 = arith.constant dense<0.000000e+00> : vector<1x2xf32>
      %213 = tpu.matmul %210, %212, %cst_98 {dimension_numbers = #tpu.dot_dimension_numbers<[1], [0], [0], [1], [0, 0, 1, 1], [], []>} : vector<1x32xf32>, vector<32x2xf32>, vector<1x2xf32> -> vector<1x2xf32>
      %214 = arith.addf %209, %213 : vector<1x2xf32>
      %215 = vector.extract_strided_slice %184 {offsets = [5, 0], sizes = [1, 32], strides = [1, 1]} : vector<8x32xf32> to vector<1x32xf32>
      %c5 = arith.constant 5 : index
      %c0_99 = arith.constant 0 : index
      %c0_100 = arith.constant 0 : index
      %216 = vector.load %arg18[%c5, %c0_99, %c0_100] : memref<8x32x2xf32, #tpu.memory_space<vmem>>, vector<1x32x2xf32>
      %217 = vector.shape_cast %216 : vector<1x32x2xf32> to vector<32x2xf32>
      %cst_101 = arith.constant dense<0.000000e+00> : vector<1x2xf32>
      %218 = tpu.matmul %215, %217, %cst_101 {dimension_numbers = #tpu.dot_dimension_numbers<[1], [0], [0], [1], [0, 0, 1, 1], [], []>} : vector<1x32xf32>, vector<32x2xf32>, vector<1x2xf32> -> vector<1x2xf32>
      %219 = arith.addf %214, %218 : vector<1x2xf32>
      %220 = vector.extract_strided_slice %184 {offsets = [6, 0], sizes = [1, 32], strides = [1, 1]} : vector<8x32xf32> to vector<1x32xf32>
      %c6 = arith.constant 6 : index
      %c0_102 = arith.constant 0 : index
      %c0_103 = arith.constant 0 : index
      %221 = vector.load %arg18[%c6, %c0_102, %c0_103] : memref<8x32x2xf32, #tpu.memory_space<vmem>>, vector<1x32x2xf32>
      %222 = vector.shape_cast %221 : vector<1x32x2xf32> to vector<32x2xf32>
      %cst_104 = arith.constant dense<0.000000e+00> : vector<1x2xf32>
      %223 = tpu.matmul %220, %222, %cst_104 {dimension_numbers = #tpu.dot_dimension_numbers<[1], [0], [0], [1], [0, 0, 1, 1], [], []>} : vector<1x32xf32>, vector<32x2xf32>, vector<1x2xf32> -> vector<1x2xf32>
      %224 = arith.addf %219, %223 : vector<1x2xf32>
      %225 = vector.extract_strided_slice %184 {offsets = [7, 0], sizes = [1, 32], strides = [1, 1]} : vector<8x32xf32> to vector<1x32xf32>
      %c7 = arith.constant 7 : index
      %c0_105 = arith.constant 0 : index
      %c0_106 = arith.constant 0 : index
      %226 = vector.load %arg18[%c7, %c0_105, %c0_106] : memref<8x32x2xf32, #tpu.memory_space<vmem>>, vector<1x32x2xf32>
      %227 = vector.shape_cast %226 : vector<1x32x2xf32> to vector<32x2xf32>
      %cst_107 = arith.constant dense<0.000000e+00> : vector<1x2xf32>
      %228 = tpu.matmul %225, %227, %cst_107 {dimension_numbers = #tpu.dot_dimension_numbers<[1], [0], [0], [1], [0, 0, 1, 1], [], []>} : vector<1x32xf32>, vector<32x2xf32>, vector<1x2xf32> -> vector<1x2xf32>
      %229 = arith.addf %224, %228 : vector<1x2xf32>
      %c0_108 = arith.constant 0 : index
      %c0_109 = arith.constant 0 : index
      %c0_110 = arith.constant 0 : index
      %230 = vector.load %arg20[%c0_108, %c0_109, %c0_110] : memref<1x1x2xf32, #tpu.memory_space<vmem>>, vector<1x1x2xf32>
      %231 = vector.shape_cast %230 : vector<1x1x2xf32> to vector<1x2xf32>
      %232 = vector.shape_cast %229 : vector<1x2xf32> to vector<1x1x2xf32>
      tpu.vector_store %arg20[%c0_108, %c0_109, %c0_110], %232 {strides = array<i32>} : memref<1x1x2xf32, #tpu.memory_space<vmem>>, vector<1x1x2xf32>,
    } else {
    }
    return
  }
  func.func @transform_0(%arg0: i32, %arg1: i32) -> (i32, i32, i32) {
    %c0_i32 = arith.constant 0 : i32
    %c0_i32_0 = arith.constant 0 : i32
    %c0_i32_1 = arith.constant 0 : i32
    return %arg0, %c0_i32, %c0_i32_0 : i32, i32, i32
  }
  func.func @transform_1(%arg0: i32, %arg1: i32) -> (i32, i32, i32) {
    %c0_i32 = arith.constant 0 : i32
    %c0_i32_0 = arith.constant 0 : i32
    %c0_i32_1 = arith.constant 0 : i32
    return %arg0, %c0_i32, %c0_i32_0 : i32, i32, i32
  }
  func.func @transform_2(%arg0: i32, %arg1: i32) -> (i32, i32) {
    %c0_i32 = arith.constant 0 : i32
    %c0_i32_0 = arith.constant 0 : i32
    %c0_i32_1 = arith.constant 0 : i32
    return %c0_i32, %c0_i32_0 : i32, i32
  }
  func.func @transform_3(%arg0: i32, %arg1: i32) -> (i32, i32) {
    %c0_i32 = arith.constant 0 : i32
    %c0_i32_0 = arith.constant 0 : i32
    %c0_i32_1 = arith.constant 0 : i32
    return %c0_i32, %c0_i32_0 : i32, i32
  }
  func.func @transform_4(%arg0: i32, %arg1: i32) -> (i32, i32, i32) {
    %c0_i32 = arith.constant 0 : i32
    %c0_i32_0 = arith.constant 0 : i32
    %c0_i32_1 = arith.constant 0 : i32
    return %arg1, %c0_i32, %c0_i32_0 : i32, i32, i32
  }
  func.func @transform_5(%arg0: i32, %arg1: i32) -> (i32, i32, i32) {
    %c0_i32 = arith.constant 0 : i32
    %c0_i32_0 = arith.constant 0 : i32
    %c0_i32_1 = arith.constant 0 : i32
    return %arg1, %c0_i32, %c0_i32_0 : i32, i32, i32
  }
  func.func @transform_6(%arg0: i32, %arg1: i32) -> (i32, i32, i32) {
    %c0_i32 = arith.constant 0 : i32
    %c0_i32_0 = arith.constant 0 : i32
    %c0_i32_1 = arith.constant 0 : i32
    return %arg1, %c0_i32, %c0_i32_0 : i32, i32, i32
  }
  func.func @transform_7(%arg0: i32, %arg1: i32) -> (i32, i32, i32) {
    %c0_i32 = arith.constant 0 : i32
    %c0_i32_0 = arith.constant 0 : i32
    %c0_i32_1 = arith.constant 0 : i32
    return %arg1, %c0_i32, %c0_i32_0 : i32, i32, i32
  }
  func.func @transform_8(%arg0: i32, %arg1: i32) -> (i32, i32, i32) {
    %c0_i32 = arith.constant 0 : i32
    %c0_i32_0 = arith.constant 0 : i32
    %c0_i32_1 = arith.constant 0 : i32
    return %arg1, %c0_i32, %c0_i32_0 : i32, i32, i32
  }
  func.func @transform_9(%arg0: i32, %arg1: i32) -> (i32, i32, i32) {
    %c0_i32 = arith.constant 0 : i32
    %c0_i32_0 = arith.constant 0 : i32
    %c0_i32_1 = arith.constant 0 : i32
    return %arg1, %c0_i32, %c0_i32_0 : i32, i32, i32
  }
  func.func @transform_10(%arg0: i32, %arg1: i32) -> (i32, i32, i32) {
    %c0_i32 = arith.constant 0 : i32
    %c0_i32_0 = arith.constant 0 : i32
    %c0_i32_1 = arith.constant 0 : i32
    return %arg1, %c0_i32, %c0_i32_0 : i32, i32, i32
  }
  func.func @transform_11(%arg0: i32, %arg1: i32) -> (i32, i32, i32) {
    %c0_i32 = arith.constant 0 : i32
    %c0_i32_0 = arith.constant 0 : i32
    %c0_i32_1 = arith.constant 0 : i32
    return %arg1, %c0_i32, %c0_i32_0 : i32, i32, i32
  }
  func.func @transform_12(%arg0: i32, %arg1: i32) -> (i32, i32, i32) {
    %c0_i32 = arith.constant 0 : i32
    %c0_i32_0 = arith.constant 0 : i32
    %c0_i32_1 = arith.constant 0 : i32
    return %arg1, %c0_i32, %c0_i32_0 : i32, i32, i32
  }
  func.func @transform_13(%arg0: i32, %arg1: i32) -> (i32, i32, i32) {
    %c0_i32 = arith.constant 0 : i32
    %c0_i32_0 = arith.constant 0 : i32
    %c0_i32_1 = arith.constant 0 : i32
    return %arg1, %c0_i32, %c0_i32_0 : i32, i32, i32
  }
  func.func @transform_14(%arg0: i32, %arg1: i32) -> (i32, i32, i32) {
    %c0_i32 = arith.constant 0 : i32
    %c0_i32_0 = arith.constant 0 : i32
    %c0_i32_1 = arith.constant 0 : i32
    return %arg1, %c0_i32, %c0_i32_0 : i32, i32, i32
  }
  func.func @transform_15(%arg0: i32, %arg1: i32) -> (i32, i32, i32) {
    %c0_i32 = arith.constant 0 : i32
    %c0_i32_0 = arith.constant 0 : i32
    %c0_i32_1 = arith.constant 0 : i32
    return %arg1, %c0_i32, %c0_i32_0 : i32, i32, i32
  }
  func.func @transform_16(%arg0: i32, %arg1: i32) -> (i32, i32, i32) {
    %c0_i32 = arith.constant 0 : i32
    %c0_i32_0 = arith.constant 0 : i32
    %c0_i32_1 = arith.constant 0 : i32
    %c0_i32_2 = arith.constant 0 : i32
    return %c0_i32, %c0_i32_0, %c0_i32_1 : i32, i32, i32
  }
  func.func @transform_17(%arg0: i32, %arg1: i32) -> (i32, i32) {
    %c0_i32 = arith.constant 0 : i32
    %c0_i32_0 = arith.constant 0 : i32
    %c0_i32_1 = arith.constant 0 : i32
    return %c0_i32, %c0_i32_0 : i32, i32
  }
  func.func @transform_18(%arg0: i32, %arg1: i32) -> (i32, i32, i32) {
    %c0_i32 = arith.constant 0 : i32
    %c0_i32_0 = arith.constant 0 : i32
    %c0_i32_1 = arith.constant 0 : i32
    return %arg0, %c0_i32, %c0_i32_0 : i32, i32, i32
  }
}

</mosaic_0001>

<bundles_post_ra>
// kernel: tpu_custom_call.1
= control target key start
LH: loop header
LB: loop body
LE: loop exit
PB: predicated region body
PF: predicated region fallthrough
CT: control target
= control target key end

     0   :  { %s3956_s0 = inlined_call_operand.vmem [shape: bf16[2,8,32], index: 0, kind: input, shape index: {}]   ;;  %s3957_s1 = inlined_call_operand.vmem [shape: f32[2,1,8], index: 1, kind: input, shape index: {}]   ;;  %s3958_s2 = inlined_call_operand.vmem [shape: f32[1,32], index: 2, kind: input, shape index: {}]   ;;  %s3959_s3 = inlined_call_operand.vmem [shape: f32[1,32], index: 3, kind: input, shape index: {}]   ;;  %s3960_s4 = inlined_call_operand.vmem [shape: bf16[2,32,96], index: 4, kind: input, shape index: {}]   ;;  %s3961_s5 = inlined_call_operand.vmem [shape: f32[2,1,96], index: 5, kind: input, shape index: {}]   ;;  %s3962_s6 = inlined_call_operand.vmem [shape: bf16[2,32,32], index: 6, kind: input, shape index: {}]   ;;  %s3963_s7 = inlined_call_operand.vmem [shape: f32[2,1,32], index: 7, kind: input, shape index: {}]   ;;  %s3964_s8 = inlined_call_operand.vmem [shape: f32[2,1,32], index: 8, kind: input, shape index: {}]   ;;  %s3965_s9 = inlined_call_operand.vmem [shape: f32[2,1,32], index: 9, kind: input, shape index: {}]   ;;  %s3966_s10 = inlined_call_operand.vmem [shape: bf16[2,32,128], index: 10, kind: input, shape index: {}]   ;;  %s3967_s11 = inlined_call_operand.vmem [shape: f32[2,1,128], index: 11, kind: input, shape index: {}]   ;;  %s3968_s12 = inlined_call_operand.vmem [shape: bf16[2,128,32], index: 12, kind: input, shape index: {}]   ;;  %s3969_s13 = inlined_call_operand.vmem [shape: f32[2,1,32], index: 13, kind: input, shape index: {}]   ;;  %s3970_s14 = inlined_call_operand.vmem [shape: f32[2,1,32], index: 14, kind: input, shape index: {}]   ;;  %s3971_s15 = inlined_call_operand.vmem [shape: f32[2,1,32], index: 15, kind: input, shape index: {}]   ;;  %s3972_s16 = inlined_call_operand.vmem [shape: f32[8,32,2], index: 16, kind: input, shape index: {}]   ;;  %s3973_s17 = inlined_call_operand.vmem [shape: f32[1,2], index: 17, kind: input, shape index: {}]   ;;  %s3974_s18 = inlined_call_operand.hbm [shape: f32[2,1,2], index: 18, kind: output, shape index: {}]  }
   0x1   :  { %3989 = sst [smem:[#allocation18_spill]] %s3956_s0 }
   0x2   :  { %3990 = sst [smem:[#allocation19_spill]] %s3957_s1 }
   0x3   :  { %3991 = sst [smem:[#allocation20_spill]] %s3958_s2 }
   0x4   :  { %3992 = sst [smem:[#allocation21_spill]] %s3959_s3 }
   0x5   :  { %3993 = sst [smem:[#allocation22_spill]] %s3960_s4 }
   0x6   :  { %3994 = sst [smem:[#allocation23_spill]] %s3962_s6 }
   0x7   :  { %3995 = sst [smem:[#allocation24_spill]] %s3965_s9 }
   0x8   :  { %3996 = sst [smem:[#allocation25_spill]] %s3966_s10 }
   0x9   :  { %3997 = sst [smem:[#allocation26_spill]] %s3970_s14 }
   0xa   :  { %3998 = sst [smem:[#allocation27_spill]] %s3971_s15 }
   0xb   :  { %3999 = sst [smem:[#allocation28_spill]] %s3972_s16 }
   0xc   :  { %4000 = sst [smem:[#allocation29_spill]] %s3973_s17 }
   0xd   :  { %4001 = sst [smem:[#allocation30_spill]] %s3974_s18 }
   0xe   :  { %23 = vsyncpa [#allocation4], 0 }
   0xf   :  { %25 = vsyncpa [#allocation4 + $0x1], 0  ;;  %s3431_s27 = smov 0   ;;  %s3433_s28 = smov 0  }
  0x10   :  { %s3435_s29 = smov 0   ;;  %s3437_s30 = smov 0  }
  0x11   :  { %s3439_s0 = smov 0   ;;  %s3441_s19 = smov 0  }
  0x12   :  { %s3443_s1 = smov 0   ;;  %s3445_s20 = smov 0  }
  0x13 LB: > { %4002 = sst [smem:[#allocation6_spill]] %s3287_s27  ;;  %s2751_s21 = sadd.s32 4294967295, %s3315_s20   ;;  %s3315_s20 = sphi %s3445_s20, %s31_s20   ;;  %s3311_s1 = sphi %s3443_s1, %s4053_s1   ;;  %s3307_s19 = sphi %s3441_s19, %s4052_s19   ;;  %s3303_s0 = sphi %s3439_s0, %s4051_s0   ;;  %s3299_s30 = sphi %s3437_s30, %s4050_s30   ;;  %s3295_s29 = sphi %s3435_s29, %s4049_s29   ;;  %s3291_s28 = sphi %s3433_s28, %s4055_s28   ;;  %s3287_s27 = sphi %s3431_s27, %s4054_s27  }
  0x14   : > { %4003 = sst [smem:[#allocation7_spill]] %s3295_s29  ;;  %s2752_s22 = sadd.s32 4294967294, %s3315_s20  }
  0x15   : > { %4004 = sst [smem:[#allocation8_spill]] %s3299_s30  ;;  %s40_s2 = sadd.s32 1, %s3307_s19 }
  0x16   : > { %4005 = sst [smem:[#allocation9_spill]] %s3303_s0  ;;  %p41_p0 = scmp.ge.s32.totalorder %s40_s2, 2 }
  0x17   : > { %4006 = sst [smem:[#allocation10_spill]] %s3307_s19  ;;  %s43_s23 = sadd.s32 1, %s3311_s1 }
  0x18   : > { %4007 = sst [smem:[#allocation11_spill]] %s3311_s1  ;;  %p508_p1 = scmp.ne.s32.totalorder %s3295_s29, %s3291_s28 }
  0x19   : > { %4008 = sst [smem:[#allocation12_spill]] %s3315_s20  ;;  %p509_p2 = scmp.eq.s32.totalorder %s2751_s21, 3 }
  0x1a   : > { %s4057_s2 = smov (%p41_p0, %s40_s2), 0  ;;  %s4059_s23 = smov (!%p41_p0, %s43_s23), %s3311_s1 }
  0x1b   : > { %4009 = sst [smem:[#allocation13_spill]] %s4057_s2  ;;  %p3480_p3 = por %p509_p2, %p508_p1 }
  0x1c   : > { %p514_p4 = scmp.ne.s32.totalorder %s3291_s28, %s3287_s27  ;;  %p45_p5 = scmp.ge.s32.totalorder %s4059_s23, 2 }
  0x1d   : > { %s4010_s24 = scalar_select %p3480_p3, 1, 0 }
  0x1e   : > { %p515_p6 = scmp.eq.s32.totalorder %s2752_s22, 3  ;;  %p2755_p7 = scmp.ge.s32.totalorder %s3315_s20, 1 }
  0x1f   : > { %4011 = sst [smem:[#allocation14_spill]] %s4010_s24  ;;  %p638_p8 = scmp.lt.s32.totalorder %s3315_s20, 5 }
  0x20   : > { %s4061_s23 = smov (%p45_p5, %s4059_s23), 0  ;;  %p3490_p9 = por %p515_p6, %p514_p4 }
  0x21   : > { %4012 = sst [smem:[#allocation15_spill]] %s4061_s23  ;;  %p639_p10 = pnand %p2755_p7, %p638_p8 }
  0x22   : > { %s4013_s25 = scalar_select %p3490_p9, 1, 0 }
  0x23   : > { %s495_s26 = ssub.s32 %s3311_s1, %s4061_s23  ;;  %s498_s21 = sadd.s32 1, %s3295_s29 }
  0x24   : > { %4014 = sst [smem:[#allocation16_spill]] %s4013_s25  ;;  %p496_p11 = scmp.eq.s32.totalorder %s495_s26, 0 }
  0x25   : > { %642 = sbr.rel (%p639_p10) target bundleno = 3538 (0xdd2), region = 92  ;;  %p737_p12 = scmp.lt.s32.totalorder (!%p639_p10), %s3303_s0, 1 }
  0x26   : > { %s3498_s2 = scalar_select %p496_p11, %s3295_s29, %s498_s21  }
  0x27   : > { %p744_p13 = scmp.lt.s32.totalorder (!%p639_p10), %s3299_s30, 1  ;;  %s4017_s27 = sld [smem:[#allocation18_spill]] (!%p639_p10) }
  0x28   : > { %4015 = sst [smem:[#allocation17_spill]] %s3498_s2  ;;  %s4024_s14 = sand.u32 (!%p639_p10), 1, %s3291_s28  }
  0x29   : > { %s4018_s4 = sld [smem:[#allocation22_spill]] (!%p639_p10)  ;;  %s3573_s15 = scalar_lea.vmem (!%p639_p10), [#allocation3], %s4024_s14 }
  0x2a   : > { %s3504_s19 = scalar_select %p737_p12, %s3303_s0, 1 }
  0x2b   : > { %s3507_s25 = scalar_select %p744_p13, %s3299_s30, 1 }
  0x2c   : > { %s2756_s26 = sshll.u32 %s3504_s19, 2  ;;  %s4019_s6 = sld [smem:[#allocation23_spill]] }
  0x2d   : > { %s740_s20 = scalar_lea.vmem %s4017_s27, %s2756_s26  ;;  %s2846_s18 = sshll.u32 %s3507_s25, 4 }
  0x2e   : > { %s4021_s10 = sld [smem:[#allocation25_spill]]  ;;  %s781_s29 = scalar_lea.vmem %s3969_s13, %s3507_s25 }
  0x2f   : > { %s3521_s17 = scalar_lea.vmem %s4018_s4, %s2846_s18  ;;  %s4022_s1 = sld [smem:[#allocation26_spill]] }
  0x30   : > { %s4025_s30 = sld [smem:[#allocation8_spill]] }
  0x32   : > { %s3530_s22 = scalar_lea.vmem %s4019_s6, %s2846_s18  ;;  %s2849_s6 = sshll.u32 %s3507_s25, 6 }
  0x33   : > { %s3561_s26 = scalar_lea.vmem %s3968_s12, %s2849_s6 }
  0x34   : > { %s3547_s16 = scalar_lea.vmem %s4021_s10, %s2846_s18  ;;  %s4023_s10 = sld [smem:[#allocation27_spill]] }
  0x35   : > { %s784_s4 = scalar_lea.vmem %s4022_s1, %s3507_s25 }
  0x36   : > { %p2765_p0 = scmp.ne.s32.totalorder %s4025_s30, 0 }
  0x37   : > { %s4026_s30 = sld [smem:[#allocation20_spill]] (!%p2765_p0) }
  0x38   : > { %792 = sbr.rel (%p2765_p0) target bundleno = 373 (0x175), region = 96  ;;  %s4027_s23 = sld [smem:[#allocation21_spill]] (!%p2765_p0) }
  0x3a   : > { %s787_s9 = scalar_lea.vmem %s4023_s10, %s3507_s25 }
  0x3d   : > { %v793_v0 = vld [vmem:[%s740_s20] sm:$0xf]  ;;  %vm797_vm0 = vcmask 261120  }
  0x3e   : > { %v794_v1 = vunpack.c.l.bf16 %v793_v0  ;;  %v2766_v12 = vld [vmem:[%s4026_s30] ss:$0 sm:$0xff] }
  0x3f   : > { %v2767_v14 = vld [vmem:[%s4027_s23] ss:$0 sm:$0xff] }
  0x40   : > { %v798_v2 = vsel %vm797_vm0, %v794_v1, 0.0 }
  0x41   : > { %799 = vadd.xlane.f32.xlu0 %v798_v2 }
  0xca   : > { %v800_v3 = vpop.xlane.xlu0 %799 }
  0xcb   : > { %v802_v4 = vmul.f32 0.03125, %v800_v3 }
  0xcd   : > { %v803_v5 = vsub.f32 %v794_v1, %v802_v4 }
  0xcf   : > { %v804_v6 = vmul.f32 %v803_v5, %v803_v5 }
  0xd1   : > { %v805_v7 = vsel %vm797_vm0, %v804_v6, 0.0 }
  0xd2   : > { %806 = vadd.xlane.f32.xlu0 %v805_v7 }
 0x15b   : > { %v807_v8 = vpop.xlane.xlu0 %806 }
 0x15c   : > { %v808_v9 = vmul.f32 0.03125, %v807_v8 }
 0x15e   : > { %v809_v10 = vadd.f32 1e-12, %v808_v9 }
 0x160   : > { %3185 = vrsqrt.f32 %v809_v10 }
 0x16d   : > { %v3186_v11 = vpop.eup %3185 }
 0x16e   : > { %v811_v13 = vmul.f32 %v3186_v11, %v803_v5 }
 0x170   : > { %v818_v15 = vmul.f32 %v2766_v12, %v811_v13 }
 0x172   : > { %v825_v16 = vadd.f32 %v2767_v14, %v818_v15 }
 0x174   : > { %826 = vst.msk [vmem:[#allocation2] sm:$0xff] %vm797_vm0, %v825_v16 }
 0x175 PF: > { %v3187_v17 = vld [vmem:[%s3521_s17 + $0x8] sm:$0xff]   ;;  %v3317_v18 = vmov 0.0   ;;  %v3188_v19 = vld [vmem:[%s3521_s17] sm:$0xff]   ;;  %vm3318_vm1 = vmmov 0   ;;  %vm852_vm2 = vcmask 261120   ;;  %s4028_s27 = scalar_lea.vmem %s3961_s5, %s3507_s25  ;;  %s3319_s2 = smov 64  }
 0x176   : > { %2924 = vmatprep.subr.bf16.mxu0 %v3317_v18  ;;  %2937 = vmatprep.subr.mxu1 %v3317_v18  ;;  %v2768_v22 = vld [vmem:[%s4028_s27] ss:$0 sm:$0xff]  ;;  %s3320_s0 = smov 96   ;;  %s3321_s24 = smov 88   ;;  %vm900_vm3 = vcmask 64512   ;;  %vm1584_vm4 = vcmask 130048  }
 0x177   : > { %2925 = vmatpush3.bf16.msra.mxu0 %v3187_v17  ;;  %2928 = vmatprep.mubr.msk.bf16.mxu0 %vm3318_vm1, %v3317_v18  ;;  %s3322_s18 = smov 120   ;;  %s3323_s3 = smov 80   ;;  %vm1586_vm5 = vcmask 195584  }
 0x178   : > { %2926 = vmatprep.subr.bf16.mxu0 %v3317_v18  ;;  %2939 = vmatprep.mubr.msk.f32.mxu1 %vm3318_vm1, %v3317_v18  ;;  %s4029_s10 = sld [smem:[#allocation19_spill]]  ;;  %s3324_s1 = smov 72  }
 0x179   : > { %s3325_s20 = smov 112   ;;  %s3327_s23 = smov 56  }
 0x17a   : > { %s3328_s17 = smov 40   ;;  %s3329_s21 = smov 48  }
 0x17b   : > { %v3591_v20 = vld [vmem:[#allocation2] sm:$0xff]  ;;  %2927 = vmatpush3.bf16.msra.mxu0 %v3188_v19  ;;  %s3330_s27 = smov 8   ;;  %s4032_s6 = scalar_lea.vmem %s3964_s8, %s3507_s25 }
 0x17c   : > { %v828_v21 = vpack.c.bf16 %v3591_v20, %v3591_v20  ;;  %2932 = vmatprep.subr.mxu0 %v3317_v18 }
 0x17e   : > { %2929 = vmatmul.mubr.msk.bf16.vlgmr.msra.gmra.mxu0 %vm852_vm2, %v828_v21  ;;  %s4030_s30 = scalar_lea.vmem %s4029_s10, %s3504_s19  ;;  %s3326_s19 = smov 104  }
 0x17f   : > { %2934 = vmatprep.mubr.msk.f32.mxu0 %vm3318_vm1, %v3317_v18  ;;  %v2774_v31 = vld [vmem:[%s4030_s30] ss:$0 sm:$0xff] }
 0x23e   : > { %v890_v23 = vpop.f32.mrf.mxu0 }
 0x23f   : > { %v3607_v24 = vadd.f32 %v2768_v22, %v890_v23 }
 0x240   : > { %v2930_v25 = vpop.f32.mrf.mxu0 }
 0x241   : > { %994 = vrot.lane.b32.xlu1 %v3607_v24, %s3319_s2  ;;  %898 = vrot.lane.b32.xlu0 %v3607_v24, %s3320_s0  ;;  %s3331_s2 = smov 16   ;;  %s3332_s0 = smov 24  }
 0x242   : > { %v893_v26 = vpop.f32.mrf.mxu0 }
 0x244   : > { %v2931_v27 = vpop.f32.mrf.mxu0 }
 0x245   : > { %1072 = vrot.lane.b32.xlu1 %v3607_v24, %s3321_s24  ;;  %s4038_s24 = sld [smem:[#allocation8_spill]] }
 0x249   : > { %1070 = vrot.lane.b32.xlu1 %v3607_v24, %s3322_s18  ;;  %s4031_s18 = scalar_lea.vmem %s3963_s7, %s3507_s25 }
 0x24b   : > { %p2806_p1 = scmp.ne.s32.totalorder %s4038_s24, 1 }
 0x24c   : > { %s4039_s14 = sld [smem:[#allocation28_spill]] (!%p2806_p1) }
 0x24d   : > { %1239 = vrot.lane.b32.xlu1 %v3607_v24, %s3323_s3 }
 0x2b3   : > { %v995_v28 = vpop.permute.xlu1 %994  ;;  %v899_v29 = vpop.permute.xlu0 %898 }
 0x2b4   : > { %2933 = vmatpush3.xpose.msk.msra.mxu0 %vm900_vm3, %v899_v29  ;;  %2938 = vmatpush3.msra.mxu1 %v995_v28 }
 0x2b5   : > { %2942 = vmatprep.subr.mxu1 %v3317_v18  ;;  %2947 = vmatprep.subr.mxu0 %v3317_v18 }
 0x2b7   : > { %2935 = vmatmul.mubr.msk.f32.vlgmr.msra.gmra.mxu0 %vm900_vm3, %v3607_v24  ;;  %v1073_v41 = vpop.permute.xlu1 %1072 }
 0x2b8   : > { %2949 = vmatprep.mubr.msk.f32.mxu0 %vm3318_vm1, %v3317_v18 }
 0x2bb   : > { %v1071_v42 = vpop.permute.xlu1 %1070 }
 0x2bf   : > { %v1240_v43 = vpop.permute.xlu1 %1239 }
 0x377   : > { %v971_v30 = vpop.f32.mrf.mxu0 }
 0x378   : > { %v975_v32 = vmul.f32 0.35355338, %v971_v30 }
 0x379   : > { %v2936_v33 = vpop.f32.mrf.mxu0 }
 0x37a   : > { %v982_v34 = vadd.f32 %v2774_v31, %v975_v32  ;;  %v3189_v32 = vld [vmem:[%s3530_s22 + $0x8] sm:$0xff]   ;;  %v3190_v33 = vld [vmem:[%s3530_s22] sm:$0xff]  }
 0x37c   : > { %v983_v35 = vsel %vm900_vm3, %v982_v34, -inf }
 0x37d   : > { %984 = vmax.xlane.f32.xlu0 %v983_v35 }
 0x393   : > { %1406 = vrot.lane.b32.xlu0 %v3607_v24, %s3324_s1 }
 0x406   : > { %v985_v36 = vpop.xlane.xlu0 %984 }
 0x407   : > { %v986_v37 = vsub.f32 %v982_v34, %v985_v36 }
 0x409   : > { %v987_v38 = vmul.f32 1.442695, %v986_v37 }
 0x40a   : > { %v1407_v48 = vpop.permute.xlu0 %1406 }
 0x40b   : > { %3201 = vpow2.f32 %v987_v38 }
 0x418   : > { %v3202_v39 = vpop.eup %3201 }
 0x419   : > { %v989_v40 = vsel %vm900_vm3, %v3202_v39, 0.0 }
 0x41a   : > { %990 = vadd.xlane.f32.xlu1 %v989_v40 }
 0x42b   : > { %1237 = vrot.lane.b32.xlu1 %v3607_v24, %s3325_s20 }
 0x42f   : > { %1404 = vrot.lane.b32.xlu1 %v3607_v24, %s3326_s19 }
 0x4a3   : > { %v991_v44 = vpop.xlane.xlu1 %990 }
 0x4a4   : > { %3203 = vrcp.f32 %v991_v44 }
 0x4a7   : > { %v1238_v47 = vpop.permute.xlu1 %1237 }
 0x4ab   : > { %v1405_v49 = vpop.permute.xlu1 %1404 }
 0x4b1   : > { %v3204_v45 = vpop.eup %3203 }
 0x4b2   : > { %v993_v46 = vmul.f32 %v3204_v45, %v3202_v39 }
 0x4b4   : > { %2940 = vmatmul.mubr.msk.f32.vlgmr.msra.gmra.mxu1 %vm900_vm3, %v993_v46 }
 0x4b5   : > { %2943 = vmatpush3.xpose.msk.msra.mxu1 %vm900_vm3, %v1073_v41  ;;  %2944 = vmatprep.mubr.msk.f32.mxu1 %vm3318_vm1, %v3317_v18 }
 0x4b6   : > { %2952 = vmatprep.subr.mxu1 %v3317_v18 }
 0x4b8   : > { %2945 = vmatmul.mubr.msk.f32.vlgmr.msra.gmra.mxu1 %vm900_vm3, %v1071_v42 }
 0x4b9   : > { %2953 = vmatpush3.xpose.msk.msra.mxu1 %vm900_vm3, %v1240_v43  ;;  %2954 = vmatprep.mubr.msk.f32.mxu1 %vm3318_vm1, %v3317_v18 }
 0x4ba   : > { %2962 = vmatprep.subr.mxu1 %v3317_v18 }
 0x4bc   : > { %2955 = vmatmul.mubr.msk.f32.vlgmr.msra.gmra.mxu1 %vm900_vm3, %v1238_v47  ;;  %v2785_v47 = vld [vmem:[%s4031_s18] ss:$0 sm:$0xff]  ;;  %s4040_s18 = sld [smem:[#allocation29_spill]] (!%p2806_p1) }
 0x4bd   : > { %2963 = vmatpush3.xpose.msk.msra.mxu1 %vm900_vm3, %v1407_v48  ;;  %2964 = vmatprep.mubr.msk.f32.mxu1 %vm3318_vm1, %v3317_v18 }
 0x4be   : > { %2988 = vmatprep.subr.bf16.mxu1 %v3317_v18 }
 0x4c0   : > { %2965 = vmatmul.mubr.msk.f32.vlgmr.msra.gmra.mxu1 %vm900_vm3, %v1405_v49 }
 0x4c1   : > { %3004 = vmatprep.mubr.msk.bf16.mxu1 %vm3318_vm1, %v3317_v18 }
 0x574   : > { %v3649_v50 = vpop.f32.mrf.mxu1 }
 0x576   : > { %v2941_v51 = vpop.f32.mrf.mxu1 }
 0x578   : > { %v1144_v52 = vpop.f32.mrf.mxu1 }
 0x579   : > { %v1148_v53 = vmul.f32 0.35355338, %v1144_v52 }
 0x57a   : > { %v2946_v54 = vpop.f32.mrf.mxu1 }
 0x57b   : > { %v1149_v55 = vadd.f32 %v2774_v31, %v1148_v53 }
 0x57c   : > { %v1311_v56 = vpop.f32.mrf.mxu1 }
 0x57d   : > { %v1315_v57 = vmul.f32 0.35355338, %v1311_v56  ;;  %v1150_v58 = vsel %vm900_vm3, %v1149_v55, -inf }
 0x57e   : > { %1151 = vmax.xlane.f32.xlu1 %v1150_v58  ;;  %v2956_v59 = vpop.f32.mrf.mxu1 }
 0x57f   : > { %v1316_v60 = vadd.f32 %v2774_v31, %v1315_v57 }
 0x580   : > { %v1478_v61 = vpop.f32.mrf.mxu1 }
 0x581   : > { %v1482_v62 = vmul.f32 0.35355338, %v1478_v61  ;;  %v1317_v63 = vsel %vm900_vm3, %v1316_v60, -inf  ;;  %v3192_v61 = vld [vmem:[%s3547_s16] sm:$0xff]  }
 0x582   : > { %1318 = vmax.xlane.f32.xlu0 %v1317_v63  ;;  %v2966_v0 = vpop.f32.mrf.mxu1 }
 0x583   : > { %v1483_v1 = vadd.f32 %v2774_v31, %v1482_v62 }
 0x585   : > { %v1484_v2 = vsel %vm900_vm3, %v1483_v1, -inf }
 0x586   : > { %1485 = vmax.xlane.f32.xlu1 %v1484_v2 }
 0x597   : > { %1161 = vrot.lane.b32.xlu1 %v3607_v24, %s3327_s23  ;;  %s4035_s23 = scalar_lea.vmem %s3967_s11, %s3507_s25 }
 0x607   : > { %v1152_v3 = vpop.xlane.xlu1 %1151 }
 0x608   : > { %v1153_v4 = vsub.f32 %v1149_v55, %v1152_v3 }
 0x60a   : > { %v1154_v5 = vmul.f32 1.442695, %v1153_v4 }
 0x60b   : > { %v1319_v6 = vpop.xlane.xlu0 %1318 }
 0x60c   : > { %3205 = vpow2.f32 %v1154_v5  ;;  %v1320_v7 = vsub.f32 %v1316_v60, %v1319_v6  ;;  %v3191_v60 = vld [vmem:[%s3547_s16 + $0x8] sm:$0xff]   ;;  %s4033_s16 = sld [smem:[#allocation24_spill]] }
 0x60e   : > { %v1321_v8 = vmul.f32 1.442695, %v1320_v7  ;;  %v3193_v7 = vld [vmem:[%s3561_s26 + $0x38] sm:$0xff]  }
 0x60f   : > { %v1486_v9 = vpop.xlane.xlu1 %1485  ;;  %2989 = vmatpush3.bf16.msra.mxu1 %v3193_v7 }
 0x610   : > { %3207 = vpow2.f32 %v1321_v8  ;;  %v1487_v10 = vsub.f32 %v1483_v1, %v1486_v9  ;;  %v2789_v1 = vld [vmem:[%s4032_s6] ss:$0 sm:$0xff]  ;;  %2990 = vmatprep.subr.bf16.mxu1 %v3317_v18  ;;  %v3194_v8 = vld [vmem:[%s3561_s26 + $0x30] sm:$0xff]   ;;  %v3195_v9 = vld [vmem:[%s3561_s26 + $0x28] sm:$0xff]  }
 0x612   : > { %v1488_v11 = vmul.f32 1.442695, %v1487_v10  ;;  %s4034_s1 = scalar_lea.vmem %s4033_s16, %s3507_s25  ;;  %v3196_v10 = vld [vmem:[%s3561_s26 + $0x20] sm:$0xff]  }
 0x613   : > { %v1162_v12 = vpop.permute.xlu1 %1161  ;;  %v2790_v3 = vld [vmem:[%s4034_s1] ss:$0 sm:$0xff]  ;;  %2991 = vmatpush3.bf16.msra.mxu1 %v3194_v8 }
 0x614   : > { %3209 = vpow2.f32 %v1488_v11  ;;  %2948 = vmatpush3.msra.mxu0 %v1162_v12  ;;  %2992 = vmatprep.subr.bf16.mxu1 %v3317_v18  ;;  %v3197_v11 = vld [vmem:[%s3561_s26 + $0x18] sm:$0xff]   ;;  %v3198_v12 = vld [vmem:[%s3561_s26 + $0x10] sm:$0xff]  }
 0x615   : > { %2957 = vmatprep.subr.mxu0 %v3317_v18 }
 0x617   : > { %2993 = vmatpush3.bf16.msra.mxu1 %v3195_v9 }
 0x618   : > { %2994 = vmatprep.subr.bf16.mxu1 %v3317_v18 }
 0x619   : > { %v3206_v13 = vpop.eup %3205 }
 0x61a   : > { %v1156_v14 = vsel %vm900_vm3, %v3206_v13, 0.0 }
 0x61b   : > { %1157 = vadd.xlane.f32.xlu1 %v1156_v14  ;;  %2995 = vmatpush3.bf16.msra.mxu1 %v3196_v10  ;;  %v3200_v14 = vld [vmem:[%s3561_s26] sm:$0xff]  }
 0x61c   : > { %2996 = vmatprep.subr.bf16.mxu1 %v3317_v18 }
 0x61d   : > { %v3208_v15 = vpop.eup %3207 }
 0x61e   : > { %v1323_v16 = vsel %vm900_vm3, %v3208_v15, 0.0 }
 0x61f   : > { %1324 = vadd.xlane.f32.xlu1 %v1323_v16  ;;  %2997 = vmatpush3.bf16.msra.mxu1 %v3197_v11 }
 0x620   : > { %2998 = vmatprep.subr.bf16.mxu1 %v3317_v18 }
 0x621   : > { %v3210_v17 = vpop.eup %3209 }
 0x622   : > { %v1490_v19 = vsel %vm900_vm3, %v3210_v17, 0.0 }
 0x623   : > { %1491 = vadd.xlane.f32.xlu0 %v1490_v19  ;;  %2999 = vmatpush3.bf16.msra.mxu1 %v3198_v12 }
 0x624   : > { %3000 = vmatprep.subr.bf16.mxu1 %v3317_v18 }
 0x630   : > { %1495 = vrot.lane.b32.xlu1 %v3607_v24, %s3328_s17 }
 0x639   : > { %1328 = vrot.lane.b32.xlu0 %v3607_v24, %s3329_s21 }
 0x6a4   : > { %v1158_v21 = vpop.xlane.xlu1 %1157 }
 0x6a5   : > { %3211 = vrcp.f32 %v1158_v21 }
 0x6a8   : > { %v1325_v22 = vpop.xlane.xlu1 %1324 }
 0x6a9   : > { %3213 = vrcp.f32 %v1325_v22 }
 0x6ac   : > { %v1492_v23 = vpop.xlane.xlu0 %1491  ;;  %v1496_v29 = vpop.permute.xlu1 %1495 }
 0x6ad   : > { %3215 = vrcp.f32 %v1492_v23 }
 0x6b0   : > { %v1329_v27 = vpop.permute.xlu0 %1328 }
 0x6b2   : > { %v3212_v25 = vpop.eup %3211 }
 0x6b3   : > { %v1160_v26 = vmul.f32 %v3212_v25, %v3206_v13  ;;  %v3199_v13 = vld [vmem:[%s3561_s26 + $0x8] sm:$0xff]  }
 0x6b4   : > { %3001 = vmatpush3.bf16.msra.mxu1 %v3199_v13 }
 0x6b5   : > { %2950 = vmatmul.mubr.msk.f32.vlgmr.msra.gmra.mxu0 %vm900_vm3, %v1160_v26  ;;  %3002 = vmatprep.subr.bf16.mxu1 %v3317_v18 }
 0x6b6   : > { %v3214_v28 = vpop.eup %3213  ;;  %2958 = vmatpush3.msra.mxu0 %v1329_v27  ;;  %2959 = vmatprep.mubr.msk.f32.mxu0 %vm3318_vm1, %v3317_v18 }
 0x6b7   : > { %2967 = vmatprep.subr.mxu0 %v3317_v18  ;;  %v1327_v24 = vmul.f32 %v3214_v28, %v3208_v15  ;;  %v2791_v15 = vld [vmem:[%s4035_s23] ss:$0 sm:$0xff] }
 0x6b8   : > { %3003 = vmatpush3.bf16.msra.mxu1 %v3200_v14 }
 0x6b9   : > { %2960 = vmatmul.mubr.msk.f32.vlgmr.msra.gmra.mxu0 %vm900_vm3, %v1327_v24 }
 0x6ba   : > { %v3216_v30 = vpop.eup %3215  ;;  %2968 = vmatpush3.msra.mxu0 %v1496_v29  ;;  %2969 = vmatprep.mubr.msk.f32.mxu0 %vm3318_vm1, %v3317_v18 }
 0x6bb   : > { %v1494_v31 = vmul.f32 %v3216_v30, %v3210_v17  ;;  %2972 = vmatprep.subr.bf16.mxu0 %v3317_v18 }
 0x6bd   : > { %2970 = vmatmul.mubr.msk.f32.vlgmr.msra.gmra.mxu0 %vm900_vm3, %v1494_v31 }
 0x6be   : > { %2976 = vmatprep.mubr.msk.bf16.mxu0 %vm3318_vm1, %v3317_v18  ;;  %2973 = vmatpush3.bf16.msra.mxu0 %v3189_v32  ;;  %v2795_v32 = vld [vmem:[%s781_s29] ss:$0 sm:$0xff] }
 0x6bf   : > { %2974 = vmatprep.subr.bf16.mxu0 %v3317_v18 }
 0x6c2   : > { %2975 = vmatpush3.bf16.msra.mxu0 %v3190_v33 }
 0x6c3   : > { %2980 = vmatprep.subr.bf16.mxu0 %v3317_v18 }
 0x775   : > { %v1233_v34 = vpop.f32.mrf.mxu0 }
 0x776   : > { %1572 = vrot.lane.b32.xlu1 %v1233_v34, %s3330_s27 }
 0x777   : > { %v2951_v35 = vpop.f32.mrf.mxu0 }
 0x779   : > { %v1400_v36 = vpop.f32.mrf.mxu0 }
 0x77a   : > { %1576 = vrot.lane.b32.xlu0 %v1400_v36, %s3331_s2 }
 0x77b   : > { %v2961_v37 = vpop.f32.mrf.mxu0 }
 0x77d   : > { %v1567_v38 = vpop.f32.mrf.mxu0 }
 0x77e   : > { %1580 = vrot.lane.b32.xlu1 %v1567_v38, %s3332_s0 }
 0x77f   : > { %v2971_v39 = vpop.f32.mrf.mxu0 }
 0x7e8   : > { %v1573_v40 = vpop.permute.xlu1 %1572 }
 0x7e9   : > { %v1583_v42 = vsel %vm900_vm3, %v3649_v50, %v1573_v40 }
 0x7ec   : > { %v1577_v41 = vpop.permute.xlu0 %1576 }
 0x7ed   : > { %v1585_v43 = vsel %vm1584_vm4, %v1583_v42, %v1577_v41 }
 0x7f0   : > { %v1581_v44 = vpop.permute.xlu1 %1580 }
 0x7f1   : > { %v1587_v45 = vsel %vm1586_vm5, %v1585_v43, %v1581_v44 }
 0x7f2   : > { %v1588_v46 = vpack.c.bf16 %v1587_v45, %v1587_v45 }
 0x7f4   : > { %2977 = vmatmul.mubr.msk.bf16.vlgmr.msra.gmra.mxu0 %vm852_vm2, %v1588_v46 }
 0x7f5   : > { %2984 = vmatprep.mubr.msk.bf16.mxu0 %vm3318_vm1, %v3317_v18  ;;  %2981 = vmatpush3.bf16.msra.mxu0 %v3191_v60 }
 0x7f6   : > { %2982 = vmatprep.subr.bf16.mxu0 %v3317_v18 }
 0x7f9   : > { %2983 = vmatpush3.bf16.msra.mxu0 %v3192_v61 }
 0x8b4   : > { %v1649_v48 = vpop.f32.mrf.mxu0 }
 0x8b5   : > { %v1650_v49 = vadd.f32 %v2785_v47, %v1649_v48 }
 0x8b6   : > { %v2978_v51 = vpop.f32.mrf.mxu0 }
 0x8b7   : > { %v1655_v50 = vadd.f32 %v1650_v49, %v3591_v20  ;;  %v2804_v49 = vld [vmem:[%s784_s4] ss:$0 sm:$0xff] }
 0x8b8   : > { %v1652_v52 = vpop.f32.mrf.mxu0 }
 0x8b9   : > { %v1658_v53 = vsel %vm852_vm2, %v1655_v50, 0.0 }
 0x8ba   : > { %1659 = vadd.xlane.f32.xlu0 %v1658_v53  ;;  %v2979_v54 = vpop.f32.mrf.mxu0 }
 0x943   : > { %v1660_v55 = vpop.xlane.xlu0 %1659 }
 0x944   : > { %v1662_v56 = vmul.f32 0.03125, %v1660_v55 }
 0x946   : > { %v1663_v57 = vsub.f32 %v1655_v50, %v1662_v56  ;;  %v2805_v50 = vld [vmem:[%s787_s9] ss:$0 sm:$0xff] }
 0x948   : > { %v1664_v58 = vmul.f32 %v1663_v57, %v1663_v57 }
 0x94a   : > { %v1665_v59 = vsel %vm852_vm2, %v1664_v58, 0.0 }
 0x94b   : > { %1666 = vadd.xlane.f32.xlu1 %v1665_v59 }
 0x9d4   : > { %v1667_v20 = vpop.xlane.xlu1 %1666 }
 0x9d5   : > { %v1668_v62 = vmul.f32 0.03125, %v1667_v20 }
 0x9d7   : > { %v1669_v63 = vadd.f32 1e-12, %v1668_v62 }
 0x9d9   : > { %3217 = vrsqrt.f32 %v1669_v63 }
 0x9e6   : > { %v3218_v0 = vpop.eup %3217 }
 0x9e7   : > { %v1671_v2 = vmul.f32 %v3218_v0, %v1663_v57 }
 0x9e9   : > { %v1678_v4 = vmul.f32 %v2789_v1, %v1671_v2 }
 0x9eb   : > { %v1685_v5 = vadd.f32 %v2790_v3, %v1678_v4 }
 0x9ed   : > { %v1686_v6 = vpack.c.bf16 %v1685_v5, %v1685_v5 }
 0x9ef   : > { %2985 = vmatmul.mubr.msk.bf16.vlgmr.msra.gmra.mxu0 %vm852_vm2, %v1686_v6 }
 0xaaf   : > { %v1747_v16 = vpop.f32.mrf.mxu0 }
 0xab0   : > { %v1748_v17 = vadd.f32 %v2791_v15, %v1747_v16 }
 0xab1   : > { %v2986_v19 = vpop.f32.mrf.mxu0 }
 0xab2   : > { %v1754_v21 = vmul.f32 0.044715, %v1748_v17  ;;  %v1753_v18 = vmul.f32 0.5, %v1748_v17 }
 0xab3   : > { %v1750_v22 = vpop.f32.mrf.mxu0 }
 0xab4   : > { %v1755_v23 = vmul.f32 %v1754_v21, %v1748_v17 }
 0xab5   : > { %v2987_v25 = vpop.f32.mrf.mxu0 }
 0xab6   : > { %v1756_v26 = vmul.f32 %v1755_v23, %v1748_v17 }
 0xab8   : > { %v1757_v27 = vadd.f32 %v1756_v26, %v1748_v17 }
 0xaba   : > { %v1758_v28 = vmul.f32 0.7978846, %v1757_v27 }
 0xabc   : > { %3219 = vtanh.f32 %v1758_v28 }
 0xac9   : > { %v3220_v24 = vpop.eup %3219 }
 0xaca   : > { %v1760_v29 = vadd.f32 1.0, %v3220_v24 }
 0xacc   : > { %v1761_v30 = vmul.f32 %v1760_v29, %v1753_v18 }
 0xace   : > { %v1762_v31 = vpack.c.bf16 %v1761_v30, %v1761_v30 }
 0xad0   : > { %3005 = vmatmul.mubr.bf16.vlgmr.msra.gmra.mxu1 %v1762_v31 }
 0xb90   : > { %v1868_v33 = vpop.f32.mrf.mxu1 }
 0xb91   : > { %v1869_v34 = vadd.f32 %v2795_v32, %v1868_v33 }
 0xb92   : > { %v3006_v35 = vpop.f32.mrf.mxu1 }
 0xb93   : > { %v1874_v36 = vadd.f32 %v1869_v34, %v1685_v5 }
 0xb94   : > { %v1871_v37 = vpop.f32.mrf.mxu1 }
 0xb95   : > { %v1877_v38 = vsel %vm852_vm2, %v1874_v36, 0.0 }
 0xb96   : > { %1878 = vadd.xlane.f32.xlu0 %v1877_v38  ;;  %v3007_v39 = vpop.f32.mrf.mxu1 }
 0xc1f   : > { %v1879_v40 = vpop.xlane.xlu0 %1878 }
 0xc20   : > { %v1880_v41 = vmul.f32 0.03125, %v1879_v40 }
 0xc22   : > { %v1881_v42 = vsub.f32 %v1874_v36, %v1880_v41 }
 0xc24   : > { %v1882_v43 = vmul.f32 %v1881_v42, %v1881_v42 }
 0xc26   : > { %v1883_v44 = vsel %vm852_vm2, %v1882_v43, 0.0 }
 0xc27   : > { %1884 = vadd.xlane.f32.xlu0 %v1883_v44 }
 0xcb0   : > { %v1885_v45 = vpop.xlane.xlu0 %1884 }
 0xcb1   : > { %v1886_v46 = vmul.f32 0.03125, %v1885_v45 }
 0xcb3   : > { %v1887_v47 = vadd.f32 1e-12, %v1886_v46 }
 0xcb5   : > { %3221 = vrsqrt.f32 %v1887_v47 }
 0xcc2   : > { %v3222_v48 = vpop.eup %3221 }
 0xcc3   : > { %v1889_v51 = vmul.f32 %v3222_v48, %v1881_v42 }
 0xcc5   : > { %v1896_v52 = vmul.f32 %v2804_v49, %v1889_v51  ;;  %1908 = sbr.rel (%p2806_p1) target bundleno = 3512 (0xdb8), region = 100 }
 0xcc7   : > { %v3740_v53 = vadd.f32 %v2805_v50, %v1896_v52 }
 0xcc9   : > { %1904 = vst.msk [vmem:[#allocation2] sm:$0xff] %vm852_vm2, %v3740_v53 }
 0xcca   : > { %v1913_v54 = vld [vmem:[%s4039_s14 + $0x18] sm:$0xff]  ;;  %v3333_v56 = vmov 0.0   ;;  %v1912_v57 = vld [vmem:[%s4039_s14 + $0x10] sm:$0xff]  ;;  %v1911_v59 = vld [vmem:[%s4039_s14 + $0x8] sm:$0xff]  ;;  %v1993_v62 = vrot.slane %v3740_v53, 1  ;;  %vm3334_vm6 = vmmov 0  }
 0xccb   : > { %v2811_v55 = vld [vmem:[%s4039_s14 + $0x38] sm:$0xff]  ;;  %3008 = vmatprep.subr.mxu0 %v3333_v56  ;;  %3019 = vmatprep.subr.mxu1 %v3333_v56  ;;  %v2810_v58 = vld [vmem:[%s4039_s14 + $0x30] sm:$0xff]  ;;  %v2809_v60 = vld [vmem:[%s4039_s14 + $0x28] sm:$0xff]  ;;  %v2072_v6 = vrot.slane %v3740_v53, 2  ;;  %v2151_v8 = vrot.slane %v3740_v53, 3  ;;  %v2230_v16 = vrot.slane %v3740_v53, 4 }
 0xccc   : > { %3009 = vmatpush3.msra.mxu0 %v1913_v54  ;;  %3020 = vmatpush3.msra.mxu1 %v2811_v55  ;;  %v1910_v61 = vld [vmem:[%s4039_s14] sm:$0xff]  ;;  %v2816_v63 = vld [vmem:[%s4039_s14 + $0x58] sm:$0xff]  ;;  %v2815_v1 = vld [vmem:[%s4039_s14 + $0x50] sm:$0xff]  ;;  %v2309_v19 = vrot.slane %v3740_v53, 5  ;;  %v2388_v18 = vrot.slane %v3740_v53, 6  ;;  %v2467_v29 = vrot.slane %v3740_v53, 7 }
 0xccd   : > { %3010 = vmatprep.subr.mxu0 %v3333_v56  ;;  %3021 = vmatprep.subr.mxu1 %v3333_v56  ;;  %v2808_v20 = vld [vmem:[%s4039_s14 + $0x20] sm:$0xff]  ;;  %v2821_v0 = vld [vmem:[%s4039_s14 + $0x78] sm:$0xff]  ;;  %v2820_v2 = vld [vmem:[%s4039_s14 + $0x70] sm:$0xff]  ;;  %vm2541_vm7 = vcmask 8192  }
 0xcce   : > { %3011 = vmatpush3.msra.mxu0 %v1912_v57  ;;  %3022 = vmatpush3.msra.mxu1 %v2810_v58  ;;  %v2814_v3 = vld [vmem:[%s4039_s14 + $0x48] sm:$0xff]  ;;  %v2813_v5 = vld [vmem:[%s4039_s14 + $0x40] sm:$0xff]  ;;  %v2826_v9 = vld [vmem:[%s4039_s14 + $0x98] sm:$0xff] }
 0xccf   : > { %3012 = vmatprep.subr.mxu0 %v3333_v56  ;;  %3023 = vmatprep.subr.mxu1 %v3333_v56  ;;  %v2819_v4 = vld [vmem:[%s4039_s14 + $0x68] sm:$0xff]  ;;  %v2818_v7 = vld [vmem:[%s4039_s14 + $0x60] sm:$0xff]  ;;  %v2831_v10 = vld [vmem:[%s4039_s14 + $0xb8] sm:$0xff] }
 0xcd0   : > { %3013 = vmatpush3.msra.mxu0 %v1911_v59  ;;  %3024 = vmatpush3.msra.mxu1 %v2809_v60  ;;  %v2825_v11 = vld [vmem:[%s4039_s14 + $0x90] sm:$0xff]  ;;  %v2824_v13 = vld [vmem:[%s4039_s14 + $0x88] sm:$0xff]  ;;  %v2823_v15 = vld [vmem:[%s4039_s14 + $0x80] sm:$0xff] }
 0xcd1   : > { %3014 = vmatprep.subr.mxu0 %v3333_v56  ;;  %3025 = vmatprep.subr.mxu1 %v3333_v56  ;;  %v2830_v12 = vld [vmem:[%s4039_s14 + $0xb0] sm:$0xff]  ;;  %v2829_v14 = vld [vmem:[%s4039_s14 + $0xa8] sm:$0xff]  ;;  %v2828_v17 = vld [vmem:[%s4039_s14 + $0xa0] sm:$0xff] }
 0xcd2   : > { %3015 = vmatpush3.msra.mxu0 %v1910_v61  ;;  %3016 = vmatprep.mubr.msk.f32.mxu0 %vm3334_vm6, %v3333_v56  ;;  %v2836_v21 = vld [vmem:[%s4039_s14 + $0xd8] sm:$0xff]  ;;  %v2835_v23 = vld [vmem:[%s4039_s14 + $0xd0] sm:$0xff]  ;;  %v2834_v26 = vld [vmem:[%s4039_s14 + $0xc8] sm:$0xff] }
 0xcd3   : > { %3026 = vmatpush3.msra.mxu1 %v2808_v20  ;;  %3017 = vmatmul.mubr.msk.f32.vlgmr.msra.gmra.mxu0 %vm852_vm2, %v3740_v53  ;;  %v2841_v22 = vld [vmem:[%s4039_s14 + $0xf8] sm:$0xff]  ;;  %v2840_v25 = vld [vmem:[%s4039_s14 + $0xf0] sm:$0xff]  ;;  %v2839_v27 = vld [vmem:[%s4039_s14 + $0xe8] sm:$0xff] }
 0xcd4   : > { %3027 = vmatprep.mubr.msk.f32.mxu1 %vm3334_vm6, %v3333_v56  ;;  %3030 = vmatprep.subr.mxu0 %v3333_v56  ;;  %v2833_v28 = vld [vmem:[%s4039_s14 + $0xc0] sm:$0xff] }
 0xcd5   : > { %3041 = vmatprep.subr.mxu1 %v3333_v56  ;;  %3028 = vmatmul.mubr.msk.f32.vlgmr.msra.gmra.mxu1 %vm852_vm2, %v1993_v62  ;;  %v2838_v24 = vld [vmem:[%s4039_s14 + $0xe0] sm:$0xff] }
 0xcd6   : > { %3031 = vmatpush3.msra.mxu0 %v2816_v63  ;;  %3042 = vmatpush3.msra.mxu1 %v2821_v0  ;;  %v1909_v35 = vld [vmem:[%s4040_s18] sm:$0x1] }
 0xcd7   : > { %3032 = vmatprep.subr.mxu0 %v3333_v56  ;;  %3043 = vmatprep.subr.mxu1 %v3333_v56 }
 0xcd8   : > { %3033 = vmatpush3.msra.mxu0 %v2815_v1  ;;  %3044 = vmatpush3.msra.mxu1 %v2820_v2 }
 0xcd9   : > { %3034 = vmatprep.subr.mxu0 %v3333_v56  ;;  %3045 = vmatprep.subr.mxu1 %v3333_v56 }
 0xcda   : > { %3035 = vmatpush3.msra.mxu0 %v2814_v3  ;;  %3046 = vmatpush3.msra.mxu1 %v2819_v4 }
 0xcdb   : > { %3036 = vmatprep.subr.mxu0 %v3333_v56  ;;  %3047 = vmatprep.subr.mxu1 %v3333_v56 }
 0xcdc   : > { %3037 = vmatpush3.msra.mxu0 %v2813_v5  ;;  %3038 = vmatprep.mubr.msk.f32.mxu0 %vm3334_vm6, %v3333_v56 }
 0xcdd   : > { %3048 = vmatpush3.msra.mxu1 %v2818_v7  ;;  %3039 = vmatmul.mubr.msk.f32.vlgmr.msra.gmra.mxu0 %vm852_vm2, %v2072_v6 }
 0xcde   : > { %3049 = vmatprep.mubr.msk.f32.mxu1 %vm3334_vm6, %v3333_v56  ;;  %3052 = vmatprep.subr.mxu0 %v3333_v56 }
 0xcdf   : > { %3063 = vmatprep.subr.mxu1 %v3333_v56  ;;  %3050 = vmatmul.mubr.msk.f32.vlgmr.msra.gmra.mxu1 %vm852_vm2, %v2151_v8 }
 0xce0   : > { %3053 = vmatpush3.msra.mxu0 %v2826_v9  ;;  %3064 = vmatpush3.msra.mxu1 %v2831_v10 }
 0xce1   : > { %3054 = vmatprep.subr.mxu0 %v3333_v56  ;;  %3065 = vmatprep.subr.mxu1 %v3333_v56 }
 0xce2   : > { %3055 = vmatpush3.msra.mxu0 %v2825_v11  ;;  %3066 = vmatpush3.msra.mxu1 %v2830_v12 }
 0xce3   : > { %3056 = vmatprep.subr.mxu0 %v3333_v56  ;;  %3067 = vmatprep.subr.mxu1 %v3333_v56 }
 0xce4   : > { %3057 = vmatpush3.msra.mxu0 %v2824_v13  ;;  %3068 = vmatpush3.msra.mxu1 %v2829_v14 }
 0xce5   : > { %3058 = vmatprep.subr.mxu0 %v3333_v56  ;;  %3069 = vmatprep.subr.mxu1 %v3333_v56 }
 0xce6   : > { %3059 = vmatpush3.msra.mxu0 %v2823_v15  ;;  %3060 = vmatprep.mubr.msk.f32.mxu0 %vm3334_vm6, %v3333_v56 }
 0xce7   : > { %3070 = vmatpush3.msra.mxu1 %v2828_v17  ;;  %3061 = vmatmul.mubr.msk.f32.vlgmr.msra.gmra.mxu0 %vm852_vm2, %v2230_v16 }
 0xce8   : > { %3071 = vmatprep.mubr.msk.f32.mxu1 %vm3334_vm6, %v3333_v56  ;;  %3074 = vmatprep.subr.mxu0 %v3333_v56 }
 0xce9   : > { %3085 = vmatprep.subr.mxu1 %v3333_v56  ;;  %3072 = vmatmul.mubr.msk.f32.vlgmr.msra.gmra.mxu1 %vm852_vm2, %v2309_v19 }
 0xcea   : > { %3075 = vmatpush3.msra.mxu0 %v2836_v21  ;;  %3086 = vmatpush3.msra.mxu1 %v2841_v22 }
 0xceb   : > { %3076 = vmatprep.subr.mxu0 %v3333_v56  ;;  %3087 = vmatprep.subr.mxu1 %v3333_v56 }
 0xcec   : > { %3077 = vmatpush3.msra.mxu0 %v2835_v23  ;;  %3088 = vmatpush3.msra.mxu1 %v2840_v25 }
 0xced   : > { %3078 = vmatprep.subr.mxu0 %v3333_v56  ;;  %3089 = vmatprep.subr.mxu1 %v3333_v56 }
 0xcee   : > { %3079 = vmatpush3.msra.mxu0 %v2834_v26  ;;  %3090 = vmatpush3.msra.mxu1 %v2839_v27 }
 0xcef   : > { %3080 = vmatprep.subr.mxu0 %v3333_v56  ;;  %3091 = vmatprep.subr.mxu1 %v3333_v56 }
 0xcf0   : > { %3081 = vmatpush3.msra.mxu0 %v2833_v28  ;;  %3082 = vmatprep.mubr.msk.f32.mxu0 %vm3334_vm6, %v3333_v56 }
 0xcf1   : > { %3092 = vmatpush3.msra.mxu1 %v2838_v24  ;;  %3093 = vmatprep.mubr.msk.f32.mxu1 %vm3334_vm6, %v3333_v56 }
 0xcf2   : > { %3083 = vmatmul.mubr.msk.f32.vlgmr.msra.gmra.mxu0 %vm852_vm2, %v2388_v18  ;;  %3094 = vmatmul.mubr.msk.f32.vlgmr.msra.gmra.mxu1 %vm852_vm2, %v2467_v29 }
 0xd93   : > { %v1983_v30 = vpop.f32.mrf.mxu0 }
 0xd94   : > { %v1987_v38 = vadd.f32 %v1983_v30, %v1909_v35 }
 0xd95   : > { %v2062_v31 = vpop.f32.mrf.mxu1  ;;  %v3018_v32 = vpop.f32.mrf.mxu0 }
 0xd96   : > { %v2066_v40 = vadd.f32 %v2062_v31, %v1987_v38 }
 0xd97   : > { %v3029_v33 = vpop.f32.mrf.mxu1 }
 0xd9d   : > { %v2141_v34 = vpop.f32.mrf.mxu0 }
 0xd9e   : > { %v2145_v41 = vadd.f32 %v2141_v34, %v2066_v40 }
 0xd9f   : > { %v2220_v36 = vpop.f32.mrf.mxu1  ;;  %v3040_v37 = vpop.f32.mrf.mxu0 }
 0xda0   : > { %v2224_v45 = vadd.f32 %v2220_v36, %v2145_v41 }
 0xda1   : > { %v3051_v39 = vpop.f32.mrf.mxu1 }
 0xda7   : > { %v2299_v42 = vpop.f32.mrf.mxu0 }
 0xda8   : > { %v2303_v47 = vadd.f32 %v2299_v42, %v2224_v45 }
 0xda9   : > { %v2378_v43 = vpop.f32.mrf.mxu1  ;;  %v3062_v44 = vpop.f32.mrf.mxu0 }
 0xdaa   : > { %v2382_v48 = vadd.f32 %v2378_v43, %v2303_v47 }
 0xdab   : > { %v3073_v46 = vpop.f32.mrf.mxu1 }
 0xdb2   : > { %v2457_v49 = vpop.f32.mrf.mxu0  ;;  %v2536_v51 = vpop.f32.mrf.mxu1 }
 0xdb3   : > { %v2461_v50 = vadd.f32 %v2457_v49, %v2382_v48 }
 0xdb4   : > { %v3084_v52 = vpop.f32.mrf.mxu0  ;;  %v3095_v53 = vpop.f32.mrf.mxu1 }
 0xdb5   : > { %v2540_v54 = vadd.f32 %v2536_v51, %v2461_v50 }
 0xdb7   : > { %2542 = vst.msk [vmem:[%s3573_s15] sm:$0x1] %vm2541_vm7, %v2540_v54 }
 0xdb8 PF: > { %s4041_s3 = sld [smem:[#allocation9_spill]]  ;;  %s2556_s16 = sshll.u32 %s3573_s15, 4  ;;  %s2557_s16 = int_to_ptr.vmem [resolvable:$true] %s2556_s16 }
 0xdb9   : > { %s4043_s10 = sld [smem:[#allocation30_spill]]  ;;  %s4044_s1 = sand.u32 1, %s3291_s28  }
 0xdba   : > { %s2544_s20 = scalar_lea.sflag [#allocation4], %s4044_s1  ;;  %s3223_s19 = scalar_lea.vmem %s2557_s16, 16 }
 0xdbb   : > { %p3224_p2 = scmp.ne.s32.totalorder %s2557_s16, %s3223_s19  ;;  %s3335_s23 = smov [#allocation3]  }
 0xdbc   : > { %s3227_s26 = sshll.u32 %s3335_s23, 4  ;;  %s3228_s26 = int_to_ptr.vmem [resolvable:$false] %s3227_s26 }
 0xdbd   : > { %p3225_p4 = pnand %p3224_p2, %p3480_p3  ;;  %s3229_s17 = scalar_lea.vmem %s3228_s26, 32 }
 0xdbe   : > { %s2843_s6 = sshll.u32 %s4041_s3, 4  ;;  %p3230_p6 = scmp.lt.s32.totalorder %s2557_s16, %s3228_s26 }
 0xdbf   : > { %s2554_s30 = scalar_lea.hbm %s4043_s10, %s2843_s6  ;;  %p3226_p5 = pneg %p3225_p4 }
 0xdc0   : > { %p3231_p7 = scmp.lt.s32.totalorder %s3229_s17, %s3223_s19 }
 0xdc2   : > { %p3232_p8 = por %p3231_p7, %p3230_p6 }
 0xdc4   : > { %p3233_p10 = pnand %p3232_p8, %p3226_p5 }
 0xdc6   : > { %3236 = shalt.err (!%p3233_p10)
}
 0xdc7   : > { %s3237_s29 = scalar_lea.hbm %s2554_s30, 16  ;;  %s3241_s27 = scalar_lea.hbm %s4043_s10, 32 }
 0xdc8   : > { %p3238_p11 = scmp.ne.s32.totalorder %s2554_s30, %s3237_s29  ;;  %p3242_p0 = scmp.lt.s32.totalorder %s2554_s30, %s4043_s10 }
 0xdc9   : > { %p3243_p1 = scmp.lt.s32.totalorder %s3241_s27, %s3237_s29 }
 0xdca   : > { %p3239_p12 = pnand %p3238_p11, %p3480_p3 }
 0xdcb   : > { %p3244_p2 = por %p3243_p1, %p3242_p0 }
 0xdcc   : > { %p3240_p13 = pneg %p3239_p12 }
 0xdce   : > { %p3245_p4 = pnand %p3244_p2, %p3240_p13 }
 0xdd0   : > { %3248 = shalt.err (!%p3245_p4)
}
 0xdd1   : > { %3096 = dma.vmem_to_hbm [thread:$0]  (%p3480_p3), %s2557_s16, 16, %s2554_s30, %s2544_s20  }
 0xdd2 PF: > { %s4045_s22 = sld [smem:[#allocation12_spill]] }
 0xdd3   : > { %s4046_s24 = sld [smem:[#allocation6_spill]] }
 0xdd8   : > { %p3102_p5 = scmp.ge.s32.totalorder %s4045_s22, 2 }
 0xdd9   : > { %s2568_s3 = sand.u32 1, %s4046_s24  }
 0xdda   : > { %p3099_p6 = pnand %p3102_p5, %p3490_p9  ;;  %s2569_s6 = scalar_lea.sflag [#allocation4], %s2568_s3 }
 0xddc   : > { %p3100_p7 = pneg %p3099_p6 }
 0xdde   : > { %3282 = dma.done.wait (%p3100_p7), %s2569_s6, 16  }
 0xddf   : > { %3284 = vsyncadd (%p3100_p7), %s2569_s6, 4294967280  ;;  %s31_s20 = sadd.s32 1, %s4045_s22   ;;  %s4048_s9 = sld [smem:[#allocation7_spill]] }
 0xde0   : > { %p28_p8 = scmp.ge.s32.totalorder %s31_s20, 6   ;;  %s4049_s29 = sld [smem:[#allocation17_spill]] }
 0xde1   : > { %s4050_s30 = sld [smem:[#allocation10_spill]]  ;;  %s4054_s27 = smov %s3291_s28 }
 0xde2   : > { %s4051_s0 = sld [smem:[#allocation11_spill]]  ;;  %30 = sbr.rel (!%p28_p8) target bundleno = 19 (0x13), region = 181 }
 0xde3   : > { %s4052_s19 = sld [smem:[#allocation13_spill]] }
 0xde4   : > { %s4053_s1 = sld [smem:[#allocation15_spill]] }
 0xde5   : > { %s4055_s28 = smov %s4048_s9 }
 0xde7   :  { %2573 = vsyncpa [#allocation4], 1 }
 0xde8   :  { %2575 = vsyncpa [#allocation4 + $0x1], 1 }

</bundles_post_ra>
